<compile_context>
chip_gen: v6e
topology: v6e:2x2x1
jax: 0.10.0
libtpu: 0.0.40
codegen_flags: <defaults>
</compile_context>

<pallas_src>
import math
from functools import partial

import jax
import jax.numpy as jnp
from jax.experimental import pallas as pl
from jax.experimental.pallas import tpu as pltpu

# ----------------------------- config (small) -------------------------------
IMG = 32            # img_size
PATCH = 16          # patch_size
EMBED = 64          # embed_dim
DEPTH = 2           # depth
HEADS = 4           # num_heads
MLP_RATIO = 4
NUM_PATCHES = (IMG // PATCH) ** 2      # 4
SEQ = NUM_PATCHES + 1                  # 5 (cls token + patches)
HIDDEN = EMBED * MLP_RATIO             # 256
HEAD_DIM = EMBED // HEADS              # 16
HT = HEADS * SEQ                       # 20 (head-replicated token rows)
PATCH_DIM = 3 * PATCH * PATCH          # 768
QKV_W = 3 * 128                        # lane-padded fused qkv slab width
EPS = 1e-5                             # torch.nn.LayerNorm default


# ------------------------------ in-kernel math -------------------------------
def _erf(x):
    # Abramowitz & Stegun 7.1.26 rational approximation, |err| < 1.5e-7.
    a1, a2, a3, a4, a5 = 0.254829592, -0.284496736, 1.421413741, -1.453152027, 1.061405429
    p = 0.3275911
    ax = jnp.abs(x)
    t = 1.0 / (1.0 + p * ax)
    poly = ((((a5 * t + a4) * t + a3) * t + a2) * t + a1) * t
    y = 1.0 - poly * jnp.exp(-ax * ax)
    return jnp.where(x >= 0, y, -y)


def _gelu(x):
    # torch.nn.GELU() default = exact erf-based GELU
    return 0.5 * x * (1.0 + _erf(x * (1.0 / math.sqrt(2.0))))


def _layernorm(x, w, b):
    mean = jnp.mean(x, axis=-1, keepdims=True)
    var = jnp.mean(jnp.square(x - mean), axis=-1, keepdims=True)
    return (x - mean) * jax.lax.rsqrt(var + EPS) * w + b


# -------------------------------- fused kernel --------------------------------
def vit_kernel(patches_ref, patch_w_ref, qkv_w_ref, proj_w_ref, fc1_w_ref,
               fc2_w_ref, vecE_ref, fc1b_ref, tok_ref, mask_ref, rep_ref,
               rept_ref, norm_ref, o_ref):
    f32, bf16 = jnp.float32, jnp.bfloat16
    E = EMBED

    # ---- patch embedding: (SEQ, PATCH_DIM) @ (PATCH_DIM, E) ----
    # Row 0 of the padded patch slab is zero (cls slot); conv bias, pos-embed
    # and the cls token are all folded into tok_ref.
    pe = jnp.dot(patches_ref[0].astype(bf16), patch_w_ref[...],
                 preferred_element_type=f32)                  # (SEQ, E)
    x = pe + tok_ref[...]                                     # (SEQ, E) f32
    # dropout after pos-embed: identity in eval mode

    for l in range(DEPTH):                                    # static unroll
        ln1_w = vecE_ref[l, 0:1, :]
        ln1_b = vecE_ref[l, 1:2, :]
        proj_b = vecE_ref[l, 2:3, :]
        ln2_w = vecE_ref[l, 3:4, :]
        ln2_b = vecE_ref[l, 4:5, :]
        fc2_b = vecE_ref[l, 5:6, :]
        fc1_b = fc1b_ref[l, 0:1, :]

        # ---- x = x + attn(norm1(x)) ----
        h = _layernorm(x, ln1_w, ln1_b).astype(bf16)
        qkv = jnp.dot(h, qkv_w_ref[l], preferred_element_type=f32)   # (SEQ, 384)
        q = qkv[:, 0:E]                         # head_dim**-0.5 folded into W_q
        k = qkv[:, 128:128 + E].astype(bf16)    # lane-tile aligned slices
        v = qkv[:, 256:256 + E].astype(bf16)

        # per-(head, token) query rows, zeroed outside the head's columns
        q_exp = jnp.dot(rep_ref[...], q.astype(bf16),
                        preferred_element_type=f32) * mask_ref[...]   # (HT, E)
        s = jax.lax.dot_general(q_exp.astype(bf16), k,
                                (((1,), (1,)), ((), ())),
                                preferred_element_type=f32)           # (HT, SEQ)
        s = s - jnp.max(s, axis=-1, keepdims=True)
        p = jnp.exp(s)
        p = p * pl.reciprocal(jnp.sum(p, axis=-1, keepdims=True), approx=True)
        o_heads = jnp.dot(p.astype(bf16), v,
                          preferred_element_type=f32) * mask_ref[...]  # (HT, E)
        attn = jnp.dot(rept_ref[...], o_heads.astype(bf16),
                       preferred_element_type=f32)                     # (SEQ, E)
        x = x + jnp.dot(attn.astype(bf16), proj_w_ref[l],
                        preferred_element_type=f32) + proj_b

        # ---- x = x + mlp(norm2(x)) ----  (dropout = identity in eval)
        h2 = _layernorm(x, ln2_w, ln2_b).astype(bf16)
        hh = jnp.dot(h2, fc1_w_ref[l], preferred_element_type=f32) + fc1_b
        hh = _gelu(hh).astype(bf16)
        x = x + jnp.dot(hh, fc2_w_ref[l], preferred_element_type=f32) + fc2_b

    # ---- final layernorm on the cls token only ----
    o_ref[0] = _layernorm(x[0:1, :], norm_ref[0:1, :], norm_ref[1:2, :])


# --------------------------------- wrapper ------------------------------------
def vit_forward(x, packed):
    B = x.shape[0]
    Hp = IMG // PATCH
    # Patchify (plain-JAX layout glue): (B,3,H,W) -> (B, P, 3*ps*ps), (c,kh,kw) order.
    patches = (x.reshape(B, 3, Hp, PATCH, Hp, PATCH)
                .transpose(0, 2, 4, 1, 3, 5)
                .reshape(B, NUM_PATCHES, PATCH_DIM))
    # Prepend a zero row (cls slot) so the patch matmul directly yields (SEQ, E).
    patches = jnp.concatenate(
        [jnp.zeros((B, 1, PATCH_DIM), patches.dtype), patches], axis=1)

    weights = (packed['patch_w'], packed['qkv_w'], packed['proj_w'],
               packed['fc1_w'], packed['fc2_w'], packed['vecE'],
               packed['fc1_b'], packed['tok_full'], packed['mask_exp'],
               packed['rep'], packed['rep_t'], packed['norm_wb'])

    def rep_spec(a):                       # replicated (weight) input
        n = a.ndim
        return pl.BlockSpec(a.shape, lambda b, _n=n: (0,) * _n)

    out = pl.pallas_call(
        vit_kernel,
        out_shape=jax.ShapeDtypeStruct((B, 1, EMBED), jnp.float32),
        grid=(B,),
        in_specs=[pl.BlockSpec((1, SEQ, PATCH_DIM), lambda b: (b, 0, 0))]
                 + [rep_spec(w) for w in weights],
        out_specs=pl.BlockSpec((1, 1, EMBED), lambda b: (b, 0, 0)),
        compiler_params=pltpu.CompilerParams(
            dimension_semantics=("parallel",)),
    )(patches, *weights)
    return out.reshape(B, EMBED)


# ------------------------------ parameter prep --------------------------------
def init_params(key):
    keys = jax.random.split(key, 64)
    it = iter(keys)

    def tn(shape, std=0.02):
        return jax.random.truncated_normal(next(it), -2.0, 2.0, shape,
                                           jnp.float32) * std

    conv_w = tn((EMBED, 3, PATCH, PATCH))   # torch Conv2d weight (E, 3, ps, ps)
    params = {
        'patch_w': conv_w.reshape(EMBED, PATCH_DIM).T,   # x_patch @ W
        'patch_b': tn((1, EMBED)),
        'cls_token': tn((1, 1, EMBED)),
        'pos_embed': tn((1, SEQ, EMBED)),
        'norm_w': jnp.ones((1, EMBED), jnp.float32),
        'norm_b': jnp.zeros((1, EMBED), jnp.float32),
        'blocks': [],
    }
    for _ in range(DEPTH):
        # torch Linear stores (out, in); transpose so kernels do x @ W
        blk = {
            'ln1_w': jnp.ones((1, EMBED), jnp.float32),
            'ln1_b': jnp.zeros((1, EMBED), jnp.float32),
            'qkv_w': tn((3 * EMBED, EMBED)).T,          # (E, 3E), no bias
            'proj_w': tn((EMBED, EMBED)).T,
            'proj_b': jnp.zeros((1, EMBED), jnp.float32),
            'ln2_w': jnp.ones((1, EMBED), jnp.float32),
            'ln2_b': jnp.zeros((1, EMBED), jnp.float32),
            'fc1_w': tn((HIDDEN, EMBED)).T,
            'fc1_b': jnp.zeros((1, HIDDEN), jnp.float32),
            'fc2_w': tn((EMBED, HIDDEN)).T,
            'fc2_b': jnp.zeros((1, EMBED), jnp.float32),
        }
        params['blocks'].append(blk)
    return params


def pack_params(params):
    E, H = EMBED, HIDDEN
    bf16 = jnp.bfloat16
    blocks = params['blocks']
    scale = HEAD_DIM ** (-0.5)

    # Fused, lane-padded QKV slab: q @ lane 0, k @ 128, v @ 256 (tile aligned).
    qkv_slabs = []
    for b in blocks:
        w = b['qkv_w']                                   # (E, 3E)
        slab = jnp.zeros((E, QKV_W), jnp.float32)
        slab = slab.at[:, 0:E].set(w[:, 0:E] * scale)    # fold softmax scale
        slab = slab.at[:, 128:128 + E].set(w[:, E:2 * E])
        slab = slab.at[:, 256:256 + E].set(w[:, 2 * E:3 * E])
        qkv_slabs.append(slab)
    qkv_w = jnp.stack(qkv_slabs).astype(bf16)            # (DEPTH, E, 384)

    proj_w = jnp.stack([b['proj_w'] for b in blocks]).astype(bf16)   # (DEPTH, E, E)
    fc1_w = jnp.stack([b['fc1_w'] for b in blocks]).astype(bf16)     # (DEPTH, E, H)
    fc2_w = jnp.stack([b['fc2_w'] for b in blocks]).astype(bf16)     # (DEPTH, H, E)

    vecE = jnp.stack([jnp.concatenate(
        [b['ln1_w'], b['ln1_b'], b['proj_b'], b['ln2_w'], b['ln2_b'],
         b['fc2_b'], jnp.zeros((2, E), jnp.float32)], axis=0)
        for b in blocks])                                # (DEPTH, 8, E) f32
    fc1_b = jnp.stack([b['fc1_b'] for b in blocks])      # (DEPTH, 1, H) f32

    pos = params['pos_embed'][0]                         # (SEQ, E)
    cls = params['cls_token'][0, 0]                      # (E,)
    patch_b = params['patch_b'][0]                       # (E,)  conv bias folded
    tok_full = jnp.concatenate([(cls + pos[0])[None, :],
                                pos[1:] + patch_b[None, :]], axis=0)  # (SEQ, E)

    head_of_col = jnp.arange(E) // HEAD_DIM
    head_of_row = jnp.arange(HT) // SEQ
    mask_exp = (head_of_row[:, None] == head_of_col[None, :]).astype(jnp.float32)
    tok_of_row = jnp.arange(HT) % SEQ
    rep = (tok_of_row[:, None] == jnp.arange(SEQ)[None, :]).astype(jnp.float32)

    norm_wb = jnp.concatenate([params['norm_w'], params['norm_b']], axis=0)

    return {'patch_w': params['patch_w'].astype(bf16),
            'qkv_w': qkv_w, 'proj_w': proj_w, 'fc1_w': fc1_w, 'fc2_w': fc2_w,
            'vecE': vecE, 'fc1_b': fc1_b, 'tok_full': tok_full,
            'mask_exp': mask_exp,
            'rep': rep.astype(bf16), 'rep_t': rep.T.astype(bf16),
            'norm_wb': norm_wb}


# ---------------------------------- main ---------------------------------------
if __name__ == "__main__":
    key = jax.random.PRNGKey(0)
    pkey, xkey = jax.random.split(key)
    params = init_params(pkey)
    packed = pack_params(params)
    B = 2
    x = jax.random.normal(xkey, (B, 3, IMG, IMG), jnp.float32)

    fwd = jax.jit(partial(vit_forward, packed=packed))
    out = fwd(x)
    jax.block_until_ready(out)
    assert out.shape == (B, EMBED), out.shape
    assert bool(jnp.all(jnp.isfinite(out)))
    print("KERNEL_OK")
</pallas_src>

<mosaic_0001>
module attributes {stable_mosaic.version = 11 : i64} {
  func.func @vit_kernel(%arg0: i32, %arg1: memref<1x5x768xf32, #tpu.memory_space<vmem>>, %arg2: memref<768x64xbf16, #tpu.memory_space<vmem>>, %arg3: memref<2x64x384xbf16, #tpu.memory_space<vmem>>, %arg4: memref<2x64x64xbf16, #tpu.memory_space<vmem>>, %arg5: memref<2x64x256xbf16, #tpu.memory_space<vmem>>, %arg6: memref<2x256x64xbf16, #tpu.memory_space<vmem>>, %arg7: memref<2x8x64xf32, #tpu.memory_space<vmem>>, %arg8: memref<2x1x256xf32, #tpu.memory_space<vmem>>, %arg9: memref<5x64xf32, #tpu.memory_space<vmem>>, %arg10: memref<20x64xf32, #tpu.memory_space<vmem>>, %arg11: memref<20x5xbf16, #tpu.memory_space<vmem>>, %arg12: memref<5x20xbf16, #tpu.memory_space<vmem>>, %arg13: memref<2x64xf32, #tpu.memory_space<vmem>>, %arg14: memref<1x1x64xf32, #tpu.memory_space<vmem>>) attributes {dimension_semantics = [#tpu.dimension_semantics<parallel>], iteration_bounds = array<i64: 2>, scalar_prefetch = 0 : i64, scratch_operands = 0 : i64, tpu.core_type = #tpu.core_type<tc>, window_params = [{transform_indices = @transform_0, window_bounds = array<i64: 1, 5, 768>}, {pipeline_mode = #tpu.pipeline_mode<synchronous>, transform_indices = @transform_1, window_bounds = array<i64: 768, 64>}, {pipeline_mode = #tpu.pipeline_mode<synchronous>, transform_indices = @transform_2, window_bounds = array<i64: 2, 64, 384>}, {pipeline_mode = #tpu.pipeline_mode<synchronous>, transform_indices = @transform_3, window_bounds = array<i64: 2, 64, 64>}, {pipeline_mode = #tpu.pipeline_mode<synchronous>, transform_indices = @transform_4, window_bounds = array<i64: 2, 64, 256>}, {pipeline_mode = #tpu.pipeline_mode<synchronous>, transform_indices = @transform_5, window_bounds = array<i64: 2, 256, 64>}, {pipeline_mode = #tpu.pipeline_mode<synchronous>, transform_indices = @transform_6, window_bounds = array<i64: 2, 8, 64>}, {pipeline_mode = #tpu.pipeline_mode<synchronous>, transform_indices = @transform_7, window_bounds = array<i64: 2, 1, 256>}, {pipeline_mode = #tpu.pipeline_mode<synchronous>, transform_indices = @transform_8, window_bounds = array<i64: 5, 64>}, {pipeline_mode = #tpu.pipeline_mode<synchronous>, transform_indices = @transform_9, window_bounds = array<i64: 20, 64>}, {pipeline_mode = #tpu.pipeline_mode<synchronous>, transform_indices = @transform_10, window_bounds = array<i64: 20, 5>}, {pipeline_mode = #tpu.pipeline_mode<synchronous>, transform_indices = @transform_11, window_bounds = array<i64: 5, 20>}, {pipeline_mode = #tpu.pipeline_mode<synchronous>, transform_indices = @transform_12, window_bounds = array<i64: 2, 64>}, {transform_indices = @transform_13, window_bounds = array<i64: 1, 1, 64>}]} {
    %c0 = arith.constant 0 : index
    %c0_0 = arith.constant 0 : index
    %c0_1 = arith.constant 0 : index
    %0 = vector.load %arg1[%c0, %c0_0, %c0_1] : memref<1x5x768xf32, #tpu.memory_space<vmem>>, vector<1x5x768xf32>
    %1 = vector.shape_cast %0 : vector<1x5x768xf32> to vector<5x768xf32>
    %2 = arith.truncf %1 : vector<5x768xf32> to vector<5x768xbf16>
    %c0_2 = arith.constant 0 : index
    %c0_3 = arith.constant 0 : index
    %3 = vector.load %arg2[%c0_2, %c0_3] : memref<768x64xbf16, #tpu.memory_space<vmem>>, vector<768x64xbf16>
    %cst = arith.constant dense<0.000000e+00> : vector<5x64xf32>
    %4 = tpu.matmul %2, %3, %cst {dimension_numbers = #tpu.dot_dimension_numbers<[1], [0], [0], [1], [0, 0, 1, 1], [], []>} : vector<5x768xbf16>, vector<768x64xbf16>, vector<5x64xf32> -> vector<5x64xf32>
    %c0_4 = arith.constant 0 : index
    %c0_5 = arith.constant 0 : index
    %5 = vector.load %arg9[%c0_4, %c0_5] : memref<5x64xf32, #tpu.memory_space<vmem>>, vector<5x64xf32>
    %6 = arith.addf %4, %5 : vector<5x64xf32>
    %c0_6 = arith.constant 0 : index
    %c0_7 = arith.constant 0 : index
    %c0_8 = arith.constant 0 : index
    %7 = vector.load %arg7[%c0_6, %c0_7, %c0_8] : memref<2x8x64xf32, #tpu.memory_space<vmem>>, vector<1x1x64xf32>
    %8 = vector.shape_cast %7 : vector<1x1x64xf32> to vector<1x64xf32>
    %c0_9 = arith.constant 0 : index
    %c1 = arith.constant 1 : index
    %c0_10 = arith.constant 0 : index
    %9 = vector.load %arg7[%c0_9, %c1, %c0_10] : memref<2x8x64xf32, #tpu.memory_space<vmem>>, vector<1x1x64xf32>
    %10 = vector.shape_cast %9 : vector<1x1x64xf32> to vector<1x64xf32>
    %c0_11 = arith.constant 0 : index
    %c2 = arith.constant 2 : index
    %c0_12 = arith.constant 0 : index
    %11 = vector.load %arg7[%c0_11, %c2, %c0_12] : memref<2x8x64xf32, #tpu.memory_space<vmem>>, vector<1x1x64xf32>
    %12 = vector.shape_cast %11 : vector<1x1x64xf32> to vector<1x64xf32>
    %c0_13 = arith.constant 0 : index
    %c3 = arith.constant 3 : index
    %c0_14 = arith.constant 0 : index
    %13 = vector.load %arg7[%c0_13, %c3, %c0_14] : memref<2x8x64xf32, #tpu.memory_space<vmem>>, vector<1x1x64xf32>
    %14 = vector.shape_cast %13 : vector<1x1x64xf32> to vector<1x64xf32>
    %c0_15 = arith.constant 0 : index
    %c4 = arith.constant 4 : index
    %c0_16 = arith.constant 0 : index
    %15 = vector.load %arg7[%c0_15, %c4, %c0_16] : memref<2x8x64xf32, #tpu.memory_space<vmem>>, vector<1x1x64xf32>
    %16 = vector.shape_cast %15 : vector<1x1x64xf32> to vector<1x64xf32>
    %c0_17 = arith.constant 0 : index
    %c5 = arith.constant 5 : index
    %c0_18 = arith.constant 0 : index
    %17 = vector.load %arg7[%c0_17, %c5, %c0_18] : memref<2x8x64xf32, #tpu.memory_space<vmem>>, vector<1x1x64xf32>
    %18 = vector.shape_cast %17 : vector<1x1x64xf32> to vector<1x64xf32>
    %c0_19 = arith.constant 0 : index
    %c0_20 = arith.constant 0 : index
    %c0_21 = arith.constant 0 : index
    %19 = vector.load %arg8[%c0_19, %c0_20, %c0_21] : memref<2x1x256xf32, #tpu.memory_space<vmem>>, vector<1x1x256xf32>
    %20 = vector.shape_cast %19 : vector<1x1x256xf32> to vector<1x256xf32>
    %cst_22 = arith.constant dense<0.000000e+00> : vector<5xf32>
    %21 = vector.multi_reduction <add>, %6, %cst_22 [1] : vector<5x64xf32> to vector<5xf32>
    %22 = vector.shape_cast %21 : vector<5xf32> to vector<5x1xf32>
    %cst_23 = arith.constant 6.400000e+01 : f32
    %23 = vector.broadcast %cst_23 : f32 to vector<5x1xf32>
    %24 = arith.divf %22, %23 : vector<5x1xf32>
    %25 = vector.broadcast %24 : vector<5x1xf32> to vector<5x64xf32>
    %26 = arith.subf %6, %25 : vector<5x64xf32>
    %27 = arith.mulf %26, %26 : vector<5x64xf32>
    %cst_24 = arith.constant dense<0.000000e+00> : vector<5xf32>
    %28 = vector.multi_reduction <add>, %27, %cst_24 [1] : vector<5x64xf32> to vector<5xf32>
    %29 = vector.shape_cast %28 : vector<5xf32> to vector<5x1xf32>
    %cst_25 = arith.constant 6.400000e+01 : f32
    %30 = vector.broadcast %cst_25 : f32 to vector<5x1xf32>
    %31 = arith.divf %29, %30 : vector<5x1xf32>
    %32 = vector.broadcast %24 : vector<5x1xf32> to vector<5x64xf32>
    %33 = arith.subf %6, %32 : vector<5x64xf32>
    %cst_26 = arith.constant 9.99999974E-6 : f32
    %34 = vector.broadcast %cst_26 : f32 to vector<5x1xf32>
    %35 = arith.addf %31, %34 : vector<5x1xf32>
    %36 = math.rsqrt %35 : vector<5x1xf32>
    %37 = vector.broadcast %36 : vector<5x1xf32> to vector<5x64xf32>
    %38 = arith.mulf %33, %37 : vector<5x64xf32>
    %39 = vector.broadcast %8 : vector<1x64xf32> to vector<5x64xf32>
    %40 = arith.mulf %38, %39 : vector<5x64xf32>
    %41 = vector.broadcast %10 : vector<1x64xf32> to vector<5x64xf32>
    %42 = arith.addf %40, %41 : vector<5x64xf32>
    %43 = arith.truncf %42 : vector<5x64xf32> to vector<5x64xbf16>
    %c0_27 = arith.constant 0 : index
    %c0_28 = arith.constant 0 : index
    %c0_29 = arith.constant 0 : index
    %44 = vector.load %arg3[%c0_27, %c0_28, %c0_29] : memref<2x64x384xbf16, #tpu.memory_space<vmem>>, vector<1x64x384xbf16>
    %45 = vector.shape_cast %44 : vector<1x64x384xbf16> to vector<64x384xbf16>
    %cst_30 = arith.constant dense<0.000000e+00> : vector<5x384xf32>
    %46 = tpu.matmul %43, %45, %cst_30 {dimension_numbers = #tpu.dot_dimension_numbers<[1], [0], [0], [1], [0, 0, 1, 1], [], []>} : vector<5x64xbf16>, vector<64x384xbf16>, vector<5x384xf32> -> vector<5x384xf32>
    %47 = vector.extract_strided_slice %46 {offsets = [0, 0], sizes = [5, 64], strides = [1, 1]} : vector<5x384xf32> to vector<5x64xf32>
    %48 = vector.extract_strided_slice %46 {offsets = [0, 128], sizes = [5, 64], strides = [1, 1]} : vector<5x384xf32> to vector<5x64xf32>
    %49 = arith.truncf %48 : vector<5x64xf32> to vector<5x64xbf16>
    %50 = vector.extract_strided_slice %46 {offsets = [0, 256], sizes = [5, 64], strides = [1, 1]} : vector<5x384xf32> to vector<5x64xf32>
    %51 = arith.truncf %50 : vector<5x64xf32> to vector<5x64xbf16>
    %c0_31 = arith.constant 0 : index
    %c0_32 = arith.constant 0 : index
    %52 = vector.load %arg11[%c0_31, %c0_32] : memref<20x5xbf16, #tpu.memory_space<vmem>>, vector<20x5xbf16>
    %53 = arith.truncf %47 : vector<5x64xf32> to vector<5x64xbf16>
    %cst_33 = arith.constant dense<0.000000e+00> : vector<20x64xf32>
    %54 = tpu.matmul %52, %53, %cst_33 {dimension_numbers = #tpu.dot_dimension_numbers<[1], [0], [0], [1], [0, 0, 1, 1], [], []>} : vector<20x5xbf16>, vector<5x64xbf16>, vector<20x64xf32> -> vector<20x64xf32>
    %c0_34 = arith.constant 0 : index
    %c0_35 = arith.constant 0 : index
    %55 = vector.load %arg10[%c0_34, %c0_35] : memref<20x64xf32, #tpu.memory_space<vmem>>, vector<20x64xf32>
    %56 = arith.mulf %54, %55 : vector<20x64xf32>
    %57 = arith.truncf %56 : vector<20x64xf32> to vector<20x64xbf16>
    %cst_36 = arith.constant dense<0.000000e+00> : vector<20x5xf32>
    %58 = tpu.matmul %57, %49, %cst_36 {dimension_numbers = #tpu.dot_dimension_numbers<[1], [1], [0], [0], [0, 0, 1, 0], [], []>} : vector<20x64xbf16>, vector<5x64xbf16>, vector<20x5xf32> -> vector<20x5xf32>
    %cst_37 = arith.constant dense<0xFF800000> : vector<20xf32>
    %59 = vector.multi_reduction <maximumf>, %58, %cst_37 [1] : vector<20x5xf32> to vector<20xf32>
    %60 = vector.shape_cast %59 : vector<20xf32> to vector<20x1xf32>
    %61 = vector.broadcast %60 : vector<20x1xf32> to vector<20x5xf32>
    %62 = arith.subf %58, %61 : vector<20x5xf32>
    %63 = math.exp %62 : vector<20x5xf32>
    %cst_38 = arith.constant dense<0.000000e+00> : vector<20xf32>
    %64 = vector.multi_reduction <add>, %63, %cst_38 [1] : vector<20x5xf32> to vector<20xf32>
    %65 = vector.shape_cast %64 : vector<20xf32> to vector<20x1xf32>
    %66 = tpu.reciprocal %65 {approx = true} : vector<20x1xf32> -> vector<20x1xf32>
    %67 = vector.broadcast %66 : vector<20x1xf32> to vector<20x5xf32>
    %68 = arith.mulf %63, %67 : vector<20x5xf32>
    %69 = arith.truncf %68 : vector<20x5xf32> to vector<20x5xbf16>
    %cst_39 = arith.constant dense<0.000000e+00> : vector<20x64xf32>
    %70 = tpu.matmul %69, %51, %cst_39 {dimension_numbers = #tpu.dot_dimension_numbers<[1], [0], [0], [1], [0, 0, 1, 1], [], []>} : vector<20x5xbf16>, vector<5x64xbf16>, vector<20x64xf32> -> vector<20x64xf32>
    %c0_40 = arith.constant 0 : index
    %c0_41 = arith.constant 0 : index
    %71 = vector.load %arg10[%c0_40, %c0_41] : memref<20x64xf32, #tpu.memory_space<vmem>>, vector<20x64xf32>
    %72 = arith.mulf %70, %71 : vector<20x64xf32>
    %c0_42 = arith.constant 0 : index
    %c0_43 = arith.constant 0 : index
    %73 = vector.load %arg12[%c0_42, %c0_43] : memref<5x20xbf16, #tpu.memory_space<vmem>>, vector<5x20xbf16>
    %74 = arith.truncf %72 : vector<20x64xf32> to vector<20x64xbf16>
    %cst_44 = arith.constant dense<0.000000e+00> : vector<5x64xf32>
    %75 = tpu.matmul %73, %74, %cst_44 {dimension_numbers = #tpu.dot_dimension_numbers<[1], [0], [0], [1], [0, 0, 1, 1], [], []>} : vector<5x20xbf16>, vector<20x64xbf16>, vector<5x64xf32> -> vector<5x64xf32>
    %76 = arith.truncf %75 : vector<5x64xf32> to vector<5x64xbf16>
    %c0_45 = arith.constant 0 : index
    %c0_46 = arith.constant 0 : index
    %c0_47 = arith.constant 0 : index
    %77 = vector.load %arg4[%c0_45, %c0_46, %c0_47] : memref<2x64x64xbf16, #tpu.memory_space<vmem>>, vector<1x64x64xbf16>
    %78 = vector.shape_cast %77 : vector<1x64x64xbf16> to vector<64x64xbf16>
    %cst_48 = arith.constant dense<0.000000e+00> : vector<5x64xf32>
    %79 = tpu.matmul %76, %78, %cst_48 {dimension_numbers = #tpu.dot_dimension_numbers<[1], [0], [0], [1], [0, 0, 1, 1], [], []>} : vector<5x64xbf16>, vector<64x64xbf16>, vector<5x64xf32> -> vector<5x64xf32>
    %80 = arith.addf %6, %79 : vector<5x64xf32>
    %81 = vector.broadcast %12 : vector<1x64xf32> to vector<5x64xf32>
    %82 = arith.addf %80, %81 : vector<5x64xf32>
    %cst_49 = arith.constant dense<0.000000e+00> : vector<5xf32>
    %83 = vector.multi_reduction <add>, %82, %cst_49 [1] : vector<5x64xf32> to vector<5xf32>
    %84 = vector.shape_cast %83 : vector<5xf32> to vector<5x1xf32>
    %cst_50 = arith.constant 6.400000e+01 : f32
    %85 = vector.broadcast %cst_50 : f32 to vector<5x1xf32>
    %86 = arith.divf %84, %85 : vector<5x1xf32>
    %87 = vector.broadcast %86 : vector<5x1xf32> to vector<5x64xf32>
    %88 = arith.subf %82, %87 : vector<5x64xf32>
    %89 = arith.mulf %88, %88 : vector<5x64xf32>
    %cst_51 = arith.constant dense<0.000000e+00> : vector<5xf32>
    %90 = vector.multi_reduction <add>, %89, %cst_51 [1] : vector<5x64xf32> to vector<5xf32>
    %91 = vector.shape_cast %90 : vector<5xf32> to vector<5x1xf32>
    %cst_52 = arith.constant 6.400000e+01 : f32
    %92 = vector.broadcast %cst_52 : f32 to vector<5x1xf32>
    %93 = arith.divf %91, %92 : vector<5x1xf32>
    %94 = vector.broadcast %86 : vector<5x1xf32> to vector<5x64xf32>
    %95 = arith.subf %82, %94 : vector<5x64xf32>
    %cst_53 = arith.constant 9.99999974E-6 : f32
    %96 = vector.broadcast %cst_53 : f32 to vector<5x1xf32>
    %97 = arith.addf %93, %96 : vector<5x1xf32>
    %98 = math.rsqrt %97 : vector<5x1xf32>
    %99 = vector.broadcast %98 : vector<5x1xf32> to vector<5x64xf32>
    %100 = arith.mulf %95, %99 : vector<5x64xf32>
    %101 = vector.broadcast %14 : vector<1x64xf32> to vector<5x64xf32>
    %102 = arith.mulf %100, %101 : vector<5x64xf32>
    %103 = vector.broadcast %16 : vector<1x64xf32> to vector<5x64xf32>
    %104 = arith.addf %102, %103 : vector<5x64xf32>
    %105 = arith.truncf %104 : vector<5x64xf32> to vector<5x64xbf16>
    %c0_54 = arith.constant 0 : index
    %c0_55 = arith.constant 0 : index
    %c0_56 = arith.constant 0 : index
    %106 = vector.load %arg5[%c0_54, %c0_55, %c0_56] : memref<2x64x256xbf16, #tpu.memory_space<vmem>>, vector<1x64x256xbf16>
    %107 = vector.shape_cast %106 : vector<1x64x256xbf16> to vector<64x256xbf16>
    %cst_57 = arith.constant dense<0.000000e+00> : vector<5x256xf32>
    %108 = tpu.matmul %105, %107, %cst_57 {dimension_numbers = #tpu.dot_dimension_numbers<[1], [0], [0], [1], [0, 0, 1, 1], [], []>} : vector<5x64xbf16>, vector<64x256xbf16>, vector<5x256xf32> -> vector<5x256xf32>
    %109 = vector.broadcast %20 : vector<1x256xf32> to vector<5x256xf32>
    %110 = arith.addf %108, %109 : vector<5x256xf32>
    %cst_58 = arith.constant 5.000000e-01 : f32
    %111 = vector.broadcast %cst_58 : f32 to vector<5x256xf32>
    %112 = arith.mulf %111, %110 : vector<5x256xf32>
    %cst_59 = arith.constant 0.707106769 : f32
    %113 = vector.broadcast %cst_59 : f32 to vector<5x256xf32>
    %114 = arith.mulf %110, %113 : vector<5x256xf32>
    %115 = math.absf %114 : vector<5x256xf32>
    %cst_60 = arith.constant 0.327591091 : f32
    %116 = vector.broadcast %cst_60 : f32 to vector<5x256xf32>
    %117 = arith.mulf %116, %115 : vector<5x256xf32>
    %cst_61 = arith.constant 1.000000e+00 : f32
    %118 = vector.broadcast %cst_61 : f32 to vector<5x256xf32>
    %119 = arith.addf %118, %117 : vector<5x256xf32>
    %cst_62 = arith.constant 1.000000e+00 : f32
    %120 = vector.broadcast %cst_62 : f32 to vector<5x256xf32>
    %121 = arith.divf %120, %119 : vector<5x256xf32>
    %cst_63 = arith.constant 1.06140542 : f32
    %122 = vector.broadcast %cst_63 : f32 to vector<5x256xf32>
    %123 = arith.mulf %122, %121 : vector<5x256xf32>
    %cst_64 = arith.constant -1.45315206 : f32
    %124 = vector.broadcast %cst_64 : f32 to vector<5x256xf32>
    %125 = arith.addf %123, %124 : vector<5x256xf32>
    %126 = arith.mulf %125, %121 : vector<5x256xf32>
    %cst_65 = arith.constant 1.42141378 : f32
    %127 = vector.broadcast %cst_65 : f32 to vector<5x256xf32>
    %128 = arith.addf %126, %127 : vector<5x256xf32>
    %129 = arith.mulf %128, %121 : vector<5x256xf32>
    %cst_66 = arith.constant -0.284496725 : f32
    %130 = vector.broadcast %cst_66 : f32 to vector<5x256xf32>
    %131 = arith.addf %129, %130 : vector<5x256xf32>
    %132 = arith.mulf %131, %121 : vector<5x256xf32>
    %cst_67 = arith.constant 0.254829586 : f32
    %133 = vector.broadcast %cst_67 : f32 to vector<5x256xf32>
    %134 = arith.addf %132, %133 : vector<5x256xf32>
    %135 = arith.mulf %134, %121 : vector<5x256xf32>
    %cst_68 = arith.constant 0.000000e+00 : f32
    %136 = vector.broadcast %cst_68 : f32 to vector<5x256xf32>
    %137 = arith.subf %136, %115 : vector<5x256xf32>
    %138 = arith.mulf %137, %115 : vector<5x256xf32>
    %139 = math.exp %138 : vector<5x256xf32>
    %140 = arith.mulf %135, %139 : vector<5x256xf32>
    %cst_69 = arith.constant 1.000000e+00 : f32
    %141 = vector.broadcast %cst_69 : f32 to vector<5x256xf32>
    %142 = arith.subf %141, %140 : vector<5x256xf32>
    %cst_70 = arith.constant 0.000000e+00 : f32
    %143 = vector.broadcast %cst_70 : f32 to vector<5x256xf32>
    %144 = arith.cmpf oge, %114, %143 : vector<5x256xf32>
    %cst_71 = arith.constant 0.000000e+00 : f32
    %145 = vector.broadcast %cst_71 : f32 to vector<5x256xf32>
    %146 = arith.subf %145, %142 : vector<5x256xf32>
    %147 = arith.select %144, %142, %146 : vector<5x256xi1>, vector<5x256xf32>
    %cst_72 = arith.constant 1.000000e+00 : f32
    %148 = vector.broadcast %cst_72 : f32 to vector<5x256xf32>
    %149 = arith.addf %148, %147 : vector<5x256xf32>
    %150 = arith.mulf %112, %149 : vector<5x256xf32>
    %151 = arith.truncf %150 : vector<5x256xf32> to vector<5x256xbf16>
    %c0_73 = arith.constant 0 : index
    %c0_74 = arith.constant 0 : index
    %c0_75 = arith.constant 0 : index
    %152 = vector.load %arg6[%c0_73, %c0_74, %c0_75] : memref<2x256x64xbf16, #tpu.memory_space<vmem>>, vector<1x256x64xbf16>
    %153 = vector.shape_cast %152 : vector<1x256x64xbf16> to vector<256x64xbf16>
    %cst_76 = arith.constant dense<0.000000e+00> : vector<5x64xf32>
    %154 = tpu.matmul %151, %153, %cst_76 {dimension_numbers = #tpu.dot_dimension_numbers<[1], [0], [0], [1], [0, 0, 1, 1], [], []>} : vector<5x256xbf16>, vector<256x64xbf16>, vector<5x64xf32> -> vector<5x64xf32>
    %155 = arith.addf %82, %154 : vector<5x64xf32>
    %156 = vector.broadcast %18 : vector<1x64xf32> to vector<5x64xf32>
    %157 = arith.addf %155, %156 : vector<5x64xf32>
    %c1_77 = arith.constant 1 : index
    %c0_78 = arith.constant 0 : index
    %c0_79 = arith.constant 0 : index
    %158 = vector.load %arg7[%c1_77, %c0_78, %c0_79] : memref<2x8x64xf32, #tpu.memory_space<vmem>>, vector<1x1x64xf32>
    %159 = vector.shape_cast %158 : vector<1x1x64xf32> to vector<1x64xf32>
    %c1_80 = arith.constant 1 : index
    %c1_81 = arith.constant 1 : index
    %c0_82 = arith.constant 0 : index
    %160 = vector.load %arg7[%c1_80, %c1_81, %c0_82] : memref<2x8x64xf32, #tpu.memory_space<vmem>>, vector<1x1x64xf32>
    %161 = vector.shape_cast %160 : vector<1x1x64xf32> to vector<1x64xf32>
    %c1_83 = arith.constant 1 : index
    %c2_84 = arith.constant 2 : index
    %c0_85 = arith.constant 0 : index
    %162 = vector.load %arg7[%c1_83, %c2_84, %c0_85] : memref<2x8x64xf32, #tpu.memory_space<vmem>>, vector<1x1x64xf32>
    %163 = vector.shape_cast %162 : vector<1x1x64xf32> to vector<1x64xf32>
    %c1_86 = arith.constant 1 : index
    %c3_87 = arith.constant 3 : index
    %c0_88 = arith.constant 0 : index
    %164 = vector.load %arg7[%c1_86, %c3_87, %c0_88] : memref<2x8x64xf32, #tpu.memory_space<vmem>>, vector<1x1x64xf32>
    %165 = vector.shape_cast %164 : vector<1x1x64xf32> to vector<1x64xf32>
    %c1_89 = arith.constant 1 : index
    %c4_90 = arith.constant 4 : index
    %c0_91 = arith.constant 0 : index
    %166 = vector.load %arg7[%c1_89, %c4_90, %c0_91] : memref<2x8x64xf32, #tpu.memory_space<vmem>>, vector<1x1x64xf32>
    %167 = vector.shape_cast %166 : vector<1x1x64xf32> to vector<1x64xf32>
    %c1_92 = arith.constant 1 : index
    %c5_93 = arith.constant 5 : index
    %c0_94 = arith.constant 0 : index
    %168 = vector.load %arg7[%c1_92, %c5_93, %c0_94] : memref<2x8x64xf32, #tpu.memory_space<vmem>>, vector<1x1x64xf32>
    %169 = vector.shape_cast %168 : vector<1x1x64xf32> to vector<1x64xf32>
    %c1_95 = arith.constant 1 : index
    %c0_96 = arith.constant 0 : index
    %c0_97 = arith.constant 0 : index
    %170 = vector.load %arg8[%c1_95, %c0_96, %c0_97] : memref<2x1x256xf32, #tpu.memory_space<vmem>>, vector<1x1x256xf32>
    %171 = vector.shape_cast %170 : vector<1x1x256xf32> to vector<1x256xf32>
    %cst_98 = arith.constant dense<0.000000e+00> : vector<5xf32>
    %172 = vector.multi_reduction <add>, %157, %cst_98 [1] : vector<5x64xf32> to vector<5xf32>
    %173 = vector.shape_cast %172 : vector<5xf32> to vector<5x1xf32>
    %cst_99 = arith.constant 6.400000e+01 : f32
    %174 = vector.broadcast %cst_99 : f32 to vector<5x1xf32>
    %175 = arith.divf %173, %174 : vector<5x1xf32>
    %176 = vector.broadcast %175 : vector<5x1xf32> to vector<5x64xf32>
    %177 = arith.subf %157, %176 : vector<5x64xf32>
    %178 = arith.mulf %177, %177 : vector<5x64xf32>
    %cst_100 = arith.constant dense<0.000000e+00> : vector<5xf32>
    %179 = vector.multi_reduction <add>, %178, %cst_100 [1] : vector<5x64xf32> to vector<5xf32>
    %180 = vector.shape_cast %179 : vector<5xf32> to vector<5x1xf32>
    %cst_101 = arith.constant 6.400000e+01 : f32
    %181 = vector.broadcast %cst_101 : f32 to vector<5x1xf32>
    %182 = arith.divf %180, %181 : vector<5x1xf32>
    %183 = vector.broadcast %175 : vector<5x1xf32> to vector<5x64xf32>
    %184 = arith.subf %157, %183 : vector<5x64xf32>
    %cst_102 = arith.constant 9.99999974E-6 : f32
    %185 = vector.broadcast %cst_102 : f32 to vector<5x1xf32>
    %186 = arith.addf %182, %185 : vector<5x1xf32>
    %187 = math.rsqrt %186 : vector<5x1xf32>
    %188 = vector.broadcast %187 : vector<5x1xf32> to vector<5x64xf32>
    %189 = arith.mulf %184, %188 : vector<5x64xf32>
    %190 = vector.broadcast %159 : vector<1x64xf32> to vector<5x64xf32>
    %191 = arith.mulf %189, %190 : vector<5x64xf32>
    %192 = vector.broadcast %161 : vector<1x64xf32> to vector<5x64xf32>
    %193 = arith.addf %191, %192 : vector<5x64xf32>
    %194 = arith.truncf %193 : vector<5x64xf32> to vector<5x64xbf16>
    %c1_103 = arith.constant 1 : index
    %c0_104 = arith.constant 0 : index
    %c0_105 = arith.constant 0 : index
    %195 = vector.load %arg3[%c1_103, %c0_104, %c0_105] : memref<2x64x384xbf16, #tpu.memory_space<vmem>>, vector<1x64x384xbf16>
    %196 = vector.shape_cast %195 : vector<1x64x384xbf16> to vector<64x384xbf16>
    %cst_106 = arith.constant dense<0.000000e+00> : vector<5x384xf32>
    %197 = tpu.matmul %194, %196, %cst_106 {dimension_numbers = #tpu.dot_dimension_numbers<[1], [0], [0], [1], [0, 0, 1, 1], [], []>} : vector<5x64xbf16>, vector<64x384xbf16>, vector<5x384xf32> -> vector<5x384xf32>
    %198 = vector.extract_strided_slice %197 {offsets = [0, 0], sizes = [5, 64], strides = [1, 1]} : vector<5x384xf32> to vector<5x64xf32>
    %199 = vector.extract_strided_slice %197 {offsets = [0, 128], sizes = [5, 64], strides = [1, 1]} : vector<5x384xf32> to vector<5x64xf32>
    %200 = arith.truncf %199 : vector<5x64xf32> to vector<5x64xbf16>
    %201 = vector.extract_strided_slice %197 {offsets = [0, 256], sizes = [5, 64], strides = [1, 1]} : vector<5x384xf32> to vector<5x64xf32>
    %202 = arith.truncf %201 : vector<5x64xf32> to vector<5x64xbf16>
    %c0_107 = arith.constant 0 : index
    %c0_108 = arith.constant 0 : index
    %203 = vector.load %arg11[%c0_107, %c0_108] : memref<20x5xbf16, #tpu.memory_space<vmem>>, vector<20x5xbf16>
    %204 = arith.truncf %198 : vector<5x64xf32> to vector<5x64xbf16>
    %cst_109 = arith.constant dense<0.000000e+00> : vector<20x64xf32>
    %205 = tpu.matmul %203, %204, %cst_109 {dimension_numbers = #tpu.dot_dimension_numbers<[1], [0], [0], [1], [0, 0, 1, 1], [], []>} : vector<20x5xbf16>, vector<5x64xbf16>, vector<20x64xf32> -> vector<20x64xf32>
    %c0_110 = arith.constant 0 : index
    %c0_111 = arith.constant 0 : index
    %206 = vector.load %arg10[%c0_110, %c0_111] : memref<20x64xf32, #tpu.memory_space<vmem>>, vector<20x64xf32>
    %207 = arith.mulf %205, %206 : vector<20x64xf32>
    %208 = arith.truncf %207 : vector<20x64xf32> to vector<20x64xbf16>
    %cst_112 = arith.constant dense<0.000000e+00> : vector<20x5xf32>
    %209 = tpu.matmul %208, %200, %cst_112 {dimension_numbers = #tpu.dot_dimension_numbers<[1], [1], [0], [0], [0, 0, 1, 0], [], []>} : vector<20x64xbf16>, vector<5x64xbf16>, vector<20x5xf32> -> vector<20x5xf32>
    %cst_113 = arith.constant dense<0xFF800000> : vector<20xf32>
    %210 = vector.multi_reduction <maximumf>, %209, %cst_113 [1] : vector<20x5xf32> to vector<20xf32>
    %211 = vector.shape_cast %210 : vector<20xf32> to vector<20x1xf32>
    %212 = vector.broadcast %211 : vector<20x1xf32> to vector<20x5xf32>
    %213 = arith.subf %209, %212 : vector<20x5xf32>
    %214 = math.exp %213 : vector<20x5xf32>
    %cst_114 = arith.constant dense<0.000000e+00> : vector<20xf32>
    %215 = vector.multi_reduction <add>, %214, %cst_114 [1] : vector<20x5xf32> to vector<20xf32>
    %216 = vector.shape_cast %215 : vector<20xf32> to vector<20x1xf32>
    %217 = tpu.reciprocal %216 {approx = true} : vector<20x1xf32> -> vector<20x1xf32>
    %218 = vector.broadcast %217 : vector<20x1xf32> to vector<20x5xf32>
    %219 = arith.mulf %214, %218 : vector<20x5xf32>
    %220 = arith.truncf %219 : vector<20x5xf32> to vector<20x5xbf16>
    %cst_115 = arith.constant dense<0.000000e+00> : vector<20x64xf32>
    %221 = tpu.matmul %220, %202, %cst_115 {dimension_numbers = #tpu.dot_dimension_numbers<[1], [0], [0], [1], [0, 0, 1, 1], [], []>} : vector<20x5xbf16>, vector<5x64xbf16>, vector<20x64xf32> -> vector<20x64xf32>
    %c0_116 = arith.constant 0 : index
    %c0_117 = arith.constant 0 : index
    %222 = vector.load %arg10[%c0_116, %c0_117] : memref<20x64xf32, #tpu.memory_space<vmem>>, vector<20x64xf32>
    %223 = arith.mulf %221, %222 : vector<20x64xf32>
    %c0_118 = arith.constant 0 : index
    %c0_119 = arith.constant 0 : index
    %224 = vector.load %arg12[%c0_118, %c0_119] : memref<5x20xbf16, #tpu.memory_space<vmem>>, vector<5x20xbf16>
    %225 = arith.truncf %223 : vector<20x64xf32> to vector<20x64xbf16>
    %cst_120 = arith.constant dense<0.000000e+00> : vector<5x64xf32>
    %226 = tpu.matmul %224, %225, %cst_120 {dimension_numbers = #tpu.dot_dimension_numbers<[1], [0], [0], [1], [0, 0, 1, 1], [], []>} : vector<5x20xbf16>, vector<20x64xbf16>, vector<5x64xf32> -> vector<5x64xf32>
    %227 = arith.truncf %226 : vector<5x64xf32> to vector<5x64xbf16>
    %c1_121 = arith.constant 1 : index
    %c0_122 = arith.constant 0 : index
    %c0_123 = arith.constant 0 : index
    %228 = vector.load %arg4[%c1_121, %c0_122, %c0_123] : memref<2x64x64xbf16, #tpu.memory_space<vmem>>, vector<1x64x64xbf16>
    %229 = vector.shape_cast %228 : vector<1x64x64xbf16> to vector<64x64xbf16>
    %cst_124 = arith.constant dense<0.000000e+00> : vector<5x64xf32>
    %230 = tpu.matmul %227, %229, %cst_124 {dimension_numbers = #tpu.dot_dimension_numbers<[1], [0], [0], [1], [0, 0, 1, 1], [], []>} : vector<5x64xbf16>, vector<64x64xbf16>, vector<5x64xf32> -> vector<5x64xf32>
    %231 = arith.addf %157, %230 : vector<5x64xf32>
    %232 = vector.broadcast %163 : vector<1x64xf32> to vector<5x64xf32>
    %233 = arith.addf %231, %232 : vector<5x64xf32>
    %cst_125 = arith.constant dense<0.000000e+00> : vector<5xf32>
    %234 = vector.multi_reduction <add>, %233, %cst_125 [1] : vector<5x64xf32> to vector<5xf32>
    %235 = vector.shape_cast %234 : vector<5xf32> to vector<5x1xf32>
    %cst_126 = arith.constant 6.400000e+01 : f32
    %236 = vector.broadcast %cst_126 : f32 to vector<5x1xf32>
    %237 = arith.divf %235, %236 : vector<5x1xf32>
    %238 = vector.broadcast %237 : vector<5x1xf32> to vector<5x64xf32>
    %239 = arith.subf %233, %238 : vector<5x64xf32>
    %240 = arith.mulf %239, %239 : vector<5x64xf32>
    %cst_127 = arith.constant dense<0.000000e+00> : vector<5xf32>
    %241 = vector.multi_reduction <add>, %240, %cst_127 [1] : vector<5x64xf32> to vector<5xf32>
    %242 = vector.shape_cast %241 : vector<5xf32> to vector<5x1xf32>
    %cst_128 = arith.constant 6.400000e+01 : f32
    %243 = vector.broadcast %cst_128 : f32 to vector<5x1xf32>
    %244 = arith.divf %242, %243 : vector<5x1xf32>
    %245 = vector.broadcast %237 : vector<5x1xf32> to vector<5x64xf32>
    %246 = arith.subf %233, %245 : vector<5x64xf32>
    %cst_129 = arith.constant 9.99999974E-6 : f32
    %247 = vector.broadcast %cst_129 : f32 to vector<5x1xf32>
    %248 = arith.addf %244, %247 : vector<5x1xf32>
    %249 = math.rsqrt %248 : vector<5x1xf32>
    %250 = vector.broadcast %249 : vector<5x1xf32> to vector<5x64xf32>
    %251 = arith.mulf %246, %250 : vector<5x64xf32>
    %252 = vector.broadcast %165 : vector<1x64xf32> to vector<5x64xf32>
    %253 = arith.mulf %251, %252 : vector<5x64xf32>
    %254 = vector.broadcast %167 : vector<1x64xf32> to vector<5x64xf32>
    %255 = arith.addf %253, %254 : vector<5x64xf32>
    %256 = arith.truncf %255 : vector<5x64xf32> to vector<5x64xbf16>
    %c1_130 = arith.constant 1 : index
    %c0_131 = arith.constant 0 : index
    %c0_132 = arith.constant 0 : index
    %257 = vector.load %arg5[%c1_130, %c0_131, %c0_132] : memref<2x64x256xbf16, #tpu.memory_space<vmem>>, vector<1x64x256xbf16>
    %258 = vector.shape_cast %257 : vector<1x64x256xbf16> to vector<64x256xbf16>
    %cst_133 = arith.constant dense<0.000000e+00> : vector<5x256xf32>
    %259 = tpu.matmul %256, %258, %cst_133 {dimension_numbers = #tpu.dot_dimension_numbers<[1], [0], [0], [1], [0, 0, 1, 1], [], []>} : vector<5x64xbf16>, vector<64x256xbf16>, vector<5x256xf32> -> vector<5x256xf32>
    %260 = vector.broadcast %171 : vector<1x256xf32> to vector<5x256xf32>
    %261 = arith.addf %259, %260 : vector<5x256xf32>
    %cst_134 = arith.constant 5.000000e-01 : f32
    %262 = vector.broadcast %cst_134 : f32 to vector<5x256xf32>
    %263 = arith.mulf %262, %261 : vector<5x256xf32>
    %cst_135 = arith.constant 0.707106769 : f32
    %264 = vector.broadcast %cst_135 : f32 to vector<5x256xf32>
    %265 = arith.mulf %261, %264 : vector<5x256xf32>
    %266 = math.absf %265 : vector<5x256xf32>
    %cst_136 = arith.constant 0.327591091 : f32
    %267 = vector.broadcast %cst_136 : f32 to vector<5x256xf32>
    %268 = arith.mulf %267, %266 : vector<5x256xf32>
    %cst_137 = arith.constant 1.000000e+00 : f32
    %269 = vector.broadcast %cst_137 : f32 to vector<5x256xf32>
    %270 = arith.addf %269, %268 : vector<5x256xf32>
    %cst_138 = arith.constant 1.000000e+00 : f32
    %271 = vector.broadcast %cst_138 : f32 to vector<5x256xf32>
    %272 = arith.divf %271, %270 : vector<5x256xf32>
    %cst_139 = arith.constant 1.06140542 : f32
    %273 = vector.broadcast %cst_139 : f32 to vector<5x256xf32>
    %274 = arith.mulf %273, %272 : vector<5x256xf32>
    %cst_140 = arith.constant -1.45315206 : f32
    %275 = vector.broadcast %cst_140 : f32 to vector<5x256xf32>
    %276 = arith.addf %274, %275 : vector<5x256xf32>
    %277 = arith.mulf %276, %272 : vector<5x256xf32>
    %cst_141 = arith.constant 1.42141378 : f32
    %278 = vector.broadcast %cst_141 : f32 to vector<5x256xf32>
    %279 = arith.addf %277, %278 : vector<5x256xf32>
    %280 = arith.mulf %279, %272 : vector<5x256xf32>
    %cst_142 = arith.constant -0.284496725 : f32
    %281 = vector.broadcast %cst_142 : f32 to vector<5x256xf32>
    %282 = arith.addf %280, %281 : vector<5x256xf32>
    %283 = arith.mulf %282, %272 : vector<5x256xf32>
    %cst_143 = arith.constant 0.254829586 : f32
    %284 = vector.broadcast %cst_143 : f32 to vector<5x256xf32>
    %285 = arith.addf %283, %284 : vector<5x256xf32>
    %286 = arith.mulf %285, %272 : vector<5x256xf32>
    %cst_144 = arith.constant 0.000000e+00 : f32
    %287 = vector.broadcast %cst_144 : f32 to vector<5x256xf32>
    %288 = arith.subf %287, %266 : vector<5x256xf32>
    %289 = arith.mulf %288, %266 : vector<5x256xf32>
    %290 = math.exp %289 : vector<5x256xf32>
    %291 = arith.mulf %286, %290 : vector<5x256xf32>
    %cst_145 = arith.constant 1.000000e+00 : f32
    %292 = vector.broadcast %cst_145 : f32 to vector<5x256xf32>
    %293 = arith.subf %292, %291 : vector<5x256xf32>
    %cst_146 = arith.constant 0.000000e+00 : f32
    %294 = vector.broadcast %cst_146 : f32 to vector<5x256xf32>
    %295 = arith.cmpf oge, %265, %294 : vector<5x256xf32>
    %cst_147 = arith.constant 0.000000e+00 : f32
    %296 = vector.broadcast %cst_147 : f32 to vector<5x256xf32>
    %297 = arith.subf %296, %293 : vector<5x256xf32>
    %298 = arith.select %295, %293, %297 : vector<5x256xi1>, vector<5x256xf32>
    %cst_148 = arith.constant 1.000000e+00 : f32
    %299 = vector.broadcast %cst_148 : f32 to vector<5x256xf32>
    %300 = arith.addf %299, %298 : vector<5x256xf32>
    %301 = arith.mulf %263, %300 : vector<5x256xf32>
    %302 = arith.truncf %301 : vector<5x256xf32> to vector<5x256xbf16>
    %c1_149 = arith.constant 1 : index
    %c0_150 = arith.constant 0 : index
    %c0_151 = arith.constant 0 : index
    %303 = vector.load %arg6[%c1_149, %c0_150, %c0_151] : memref<2x256x64xbf16, #tpu.memory_space<vmem>>, vector<1x256x64xbf16>
    %304 = vector.shape_cast %303 : vector<1x256x64xbf16> to vector<256x64xbf16>
    %cst_152 = arith.constant dense<0.000000e+00> : vector<5x64xf32>
    %305 = tpu.matmul %302, %304, %cst_152 {dimension_numbers = #tpu.dot_dimension_numbers<[1], [0], [0], [1], [0, 0, 1, 1], [], []>} : vector<5x256xbf16>, vector<256x64xbf16>, vector<5x64xf32> -> vector<5x64xf32>
    %306 = arith.addf %233, %305 : vector<5x64xf32>
    %307 = vector.broadcast %169 : vector<1x64xf32> to vector<5x64xf32>
    %308 = arith.addf %306, %307 : vector<5x64xf32>
    %309 = vector.extract_strided_slice %308 {offsets = [0, 0], sizes = [1, 64], strides = [1, 1]} : vector<5x64xf32> to vector<1x64xf32>
    %c0_153 = arith.constant 0 : index
    %c0_154 = arith.constant 0 : index
    %310 = vector.load %arg13[%c0_153, %c0_154] : memref<2x64xf32, #tpu.memory_space<vmem>>, vector<1x64xf32>
    %c1_155 = arith.constant 1 : index
    %c0_156 = arith.constant 0 : index
    %311 = vector.load %arg13[%c1_155, %c0_156] : memref<2x64xf32, #tpu.memory_space<vmem>>, vector<1x64xf32>
    %cst_157 = arith.constant dense<0.000000e+00> : vector<1xf32>
    %312 = vector.multi_reduction <add>, %309, %cst_157 [1] : vector<1x64xf32> to vector<1xf32>
    %313 = vector.shape_cast %312 : vector<1xf32> to vector<1x1xf32>
    %cst_158 = arith.constant 6.400000e+01 : f32
    %314 = vector.broadcast %cst_158 : f32 to vector<1x1xf32>
    %315 = arith.divf %313, %314 : vector<1x1xf32>
    %316 = vector.broadcast %315 : vector<1x1xf32> to vector<1x64xf32>
    %317 = arith.subf %309, %316 : vector<1x64xf32>
    %318 = arith.mulf %317, %317 : vector<1x64xf32>
    %cst_159 = arith.constant dense<0.000000e+00> : vector<1xf32>
    %319 = vector.multi_reduction <add>, %318, %cst_159 [1] : vector<1x64xf32> to vector<1xf32>
    %320 = vector.shape_cast %319 : vector<1xf32> to vector<1x1xf32>
    %cst_160 = arith.constant 6.400000e+01 : f32
    %321 = vector.broadcast %cst_160 : f32 to vector<1x1xf32>
    %322 = arith.divf %320, %321 : vector<1x1xf32>
    %323 = vector.broadcast %315 : vector<1x1xf32> to vector<1x64xf32>
    %324 = arith.subf %309, %323 : vector<1x64xf32>
    %cst_161 = arith.constant 9.99999974E-6 : f32
    %325 = vector.broadcast %cst_161 : f32 to vector<1x1xf32>
    %326 = arith.addf %322, %325 : vector<1x1xf32>
    %327 = math.rsqrt %326 : vector<1x1xf32>
    %328 = vector.broadcast %327 : vector<1x1xf32> to vector<1x64xf32>
    %329 = arith.mulf %324, %328 : vector<1x64xf32>
    %330 = arith.mulf %329, %310 : vector<1x64xf32>
    %331 = arith.addf %330, %311 : vector<1x64xf32>
    %c0_162 = arith.constant 0 : index
    %c0_163 = arith.constant 0 : index
    %c0_164 = arith.constant 0 : index
    %332 = vector.load %arg14[%c0_162, %c0_163, %c0_164] : memref<1x1x64xf32, #tpu.memory_space<vmem>>, vector<1x1x64xf32>
    %333 = vector.shape_cast %332 : vector<1x1x64xf32> to vector<1x64xf32>
    %334 = vector.shape_cast %331 : vector<1x64xf32> to vector<1x1x64xf32>
    tpu.vector_store %arg14[%c0_162, %c0_163, %c0_164], %334 {strides = array<i32>} : memref<1x1x64xf32, #tpu.memory_space<vmem>>, vector<1x1x64xf32>,
    return
  }
  func.func @transform_0(%arg0: i32) -> (i32, i32, i32) {
    %c0_i32 = arith.constant 0 : i32
    %c0_i32_0 = arith.constant 0 : i32
    %c0_i32_1 = arith.constant 0 : i32
    return %arg0, %c0_i32, %c0_i32_0 : i32, i32, i32
  }
  func.func @transform_1(%arg0: i32) -> (i32, i32) {
    %c0_i32 = arith.constant 0 : i32
    %c0_i32_0 = arith.constant 0 : i32
    %c0_i32_1 = arith.constant 0 : i32
    return %c0_i32, %c0_i32_0 : i32, i32
  }
  func.func @transform_2(%arg0: i32) -> (i32, i32, i32) {
    %c0_i32 = arith.constant 0 : i32
    %c0_i32_0 = arith.constant 0 : i32
    %c0_i32_1 = arith.constant 0 : i32
    %c0_i32_2 = arith.constant 0 : i32
    return %c0_i32, %c0_i32_0, %c0_i32_1 : i32, i32, i32
  }
  func.func @transform_3(%arg0: i32) -> (i32, i32, i32) {
    %c0_i32 = arith.constant 0 : i32
    %c0_i32_0 = arith.constant 0 : i32
    %c0_i32_1 = arith.constant 0 : i32
    %c0_i32_2 = arith.constant 0 : i32
    return %c0_i32, %c0_i32_0, %c0_i32_1 : i32, i32, i32
  }
  func.func @transform_4(%arg0: i32) -> (i32, i32, i32) {
    %c0_i32 = arith.constant 0 : i32
    %c0_i32_0 = arith.constant 0 : i32
    %c0_i32_1 = arith.constant 0 : i32
    %c0_i32_2 = arith.constant 0 : i32
    return %c0_i32, %c0_i32_0, %c0_i32_1 : i32, i32, i32
  }
  func.func @transform_5(%arg0: i32) -> (i32, i32, i32) {
    %c0_i32 = arith.constant 0 : i32
    %c0_i32_0 = arith.constant 0 : i32
    %c0_i32_1 = arith.constant 0 : i32
    %c0_i32_2 = arith.constant 0 : i32
    return %c0_i32, %c0_i32_0, %c0_i32_1 : i32, i32, i32
  }
  func.func @transform_6(%arg0: i32) -> (i32, i32, i32) {
    %c0_i32 = arith.constant 0 : i32
    %c0_i32_0 = arith.constant 0 : i32
    %c0_i32_1 = arith.constant 0 : i32
    %c0_i32_2 = arith.constant 0 : i32
    return %c0_i32, %c0_i32_0, %c0_i32_1 : i32, i32, i32
  }
  func.func @transform_7(%arg0: i32) -> (i32, i32, i32) {
    %c0_i32 = arith.constant 0 : i32
    %c0_i32_0 = arith.constant 0 : i32
    %c0_i32_1 = arith.constant 0 : i32
    %c0_i32_2 = arith.constant 0 : i32
    return %c0_i32, %c0_i32_0, %c0_i32_1 : i32, i32, i32
  }
  func.func @transform_8(%arg0: i32) -> (i32, i32) {
    %c0_i32 = arith.constant 0 : i32
    %c0_i32_0 = arith.constant 0 : i32
    %c0_i32_1 = arith.constant 0 : i32
    return %c0_i32, %c0_i32_0 : i32, i32
  }
  func.func @transform_9(%arg0: i32) -> (i32, i32) {
    %c0_i32 = arith.constant 0 : i32
    %c0_i32_0 = arith.constant 0 : i32
    %c0_i32_1 = arith.constant 0 : i32
    return %c0_i32, %c0_i32_0 : i32, i32
  }
  func.func @transform_10(%arg0: i32) -> (i32, i32) {
    %c0_i32 = arith.constant 0 : i32
    %c0_i32_0 = arith.constant 0 : i32
    %c0_i32_1 = arith.constant 0 : i32
    return %c0_i32, %c0_i32_0 : i32, i32
  }
  func.func @transform_11(%arg0: i32) -> (i32, i32) {
    %c0_i32 = arith.constant 0 : i32
    %c0_i32_0 = arith.constant 0 : i32
    %c0_i32_1 = arith.constant 0 : i32
    return %c0_i32, %c0_i32_0 : i32, i32
  }
  func.func @transform_12(%arg0: i32) -> (i32, i32) {
    %c0_i32 = arith.constant 0 : i32
    %c0_i32_0 = arith.constant 0 : i32
    %c0_i32_1 = arith.constant 0 : i32
    return %c0_i32, %c0_i32_0 : i32, i32
  }
  func.func @transform_13(%arg0: i32) -> (i32, i32, i32) {
    %c0_i32 = arith.constant 0 : i32
    %c0_i32_0 = arith.constant 0 : i32
    %c0_i32_1 = arith.constant 0 : i32
    return %arg0, %c0_i32, %c0_i32_0 : i32, i32, i32
  }
}

</mosaic_0001>

<bundles_post_ra>
// kernel: vit_forward.1
= control target key start
LH: loop header
LB: loop body
LE: loop exit
PB: predicated region body
PF: predicated region fallthrough
CT: control target
= control target key end

     0   :  { %s4443_s0 = inlined_call_operand.vmem [shape: f32[2,5,768], index: 0, kind: input, shape index: {}]   ;;  %s4444_s1 = inlined_call_operand.vmem [shape: bf16[768,64], index: 1, kind: input, shape index: {}]   ;;  %s4445_s2 = inlined_call_operand.vmem [shape: bf16[2,64,384], index: 2, kind: input, shape index: {}]   ;;  %s4446_s3 = inlined_call_operand.vmem [shape: bf16[2,64,64], index: 3, kind: input, shape index: {}]   ;;  %s4447_s4 = inlined_call_operand.vmem [shape: bf16[2,64,256], index: 4, kind: input, shape index: {}]   ;;  %s4448_s5 = inlined_call_operand.vmem [shape: bf16[2,256,64], index: 5, kind: input, shape index: {}]   ;;  %s4449_s6 = inlined_call_operand.vmem [shape: f32[2,8,64], index: 6, kind: input, shape index: {}]   ;;  %s4450_s7 = inlined_call_operand.vmem [shape: f32[2,1,256], index: 7, kind: input, shape index: {}]   ;;  %s4451_s8 = inlined_call_operand.vmem [shape: f32[5,64], index: 8, kind: input, shape index: {}]   ;;  %s4452_s9 = inlined_call_operand.vmem [shape: f32[20,64], index: 9, kind: input, shape index: {}]   ;;  %s4453_s10 = inlined_call_operand.vmem [shape: bf16[20,5], index: 10, kind: input, shape index: {}]   ;;  %s4454_s11 = inlined_call_operand.vmem [shape: bf16[5,20], index: 11, kind: input, shape index: {}]   ;;  %s4455_s12 = inlined_call_operand.vmem [shape: f32[2,64], index: 12, kind: input, shape index: {}]   ;;  %s4456_s13 = inlined_call_operand.hbm [shape: f32[2,1,64], index: 13, kind: output, shape index: {}]  }
   0x1   :  { %4460 = sst [smem:[#allocation8_spill]] %s4443_s0 }
   0x2   :  { %18 = vsyncpa [#allocation3], 0 }
   0x3   :  { %20 = vsyncpa [#allocation3 + $0x1], 0  ;;  %s3739_s25 = smov 0   ;;  %s3741_s26 = smov 0  }
   0x4   :  { %s3743_s27 = smov 0   ;;  %s3745_s28 = smov 0  }
   0x5 LB: > { %4461 = sst [smem:[#allocation5_spill]] %s3658_s27  ;;  %s3760_s29 = sadd.s32 4294967295, %s3662_s28   ;;  %s3662_s28 = sphi %s3745_s28, %s4467_s28   ;;  %s3658_s27 = sphi %s3743_s27, %s4469_s27   ;;  %s3654_s26 = sphi %s3741_s26, %s4471_s26   ;;  %s3650_s25 = sphi %s3739_s25, %s4470_s25  }
   0x6   : > { %s2863_s30 = sadd.s32 4294967294, %s3662_s28   ;;  %s3764_s14 = sadd.s32 1, %s3662_s28  }
   0x7   : > { %4462 = sst [smem:[#allocation6_spill]] %s3764_s14  ;;  %s311_s15 = sadd.s32 1, %s3658_s27 }
   0x8   : > { %s308_s16 = ssub.s32 %s3662_s28, %s3764_s14  ;;  %p321_p0 = scmp.ne.s32.totalorder %s3658_s27, %s3654_s26 }
   0x9   : > { %p309_p1 = scmp.eq.s32.totalorder %s308_s16, 0  ;;  %p322_p2 = scmp.eq.s32.totalorder %s3760_s29, 1 }
   0xa   : > { %p327_p3 = scmp.ne.s32.totalorder %s3654_s26, %s3650_s25  ;;  %p328_p4 = scmp.eq.s32.totalorder %s2863_s30, 1 }
   0xb   : > { %s3775_s17 = scalar_select %p309_p1, %s3658_s27, %s311_s15  }
   0xc   : > { %p3777_p5 = por %p322_p2, %p321_p0  ;;  %p3781_p6 = por %p328_p4, %p327_p3 }
   0xd   : > { %4463 = sst [smem:[#allocation7_spill]] %s3775_s17  ;;  %p2866_p7 = scmp.ge.s32.totalorder %s3662_s28, 1 }
   0xe   : > { %p390_p8 = scmp.lt.s32.totalorder %s3662_s28, 3 }
  0x10   : > { %p391_p9 = pnand %p2866_p7, %p390_p8 }
  0x11   : > { %p433_p10 = scmp.lt.s32.totalorder (!%p391_p9), %s3760_s29, 1  ;;  %s4466_s0 = sld [smem:[#allocation8_spill]] (!%p391_p9) }
  0x12   : > { %394 = sbr.rel (%p391_p9) target bundleno = 5787 (0x169b), region = 72  ;;  %s431_s24 = sand.u32 (!%p391_p9), 1, %s3654_s26  }
  0x13   : > { %s3103_s27 = sshll.u32 (!%p391_p9), %s3760_s29, 4  ;;  %s432_s17 = scalar_lea.vmem (!%p391_p9), [#allocation2], %s431_s24 }
  0x14   : > { %s2806_s23 = scalar_lea.hbm (!%p391_p9), %s4456_s13, %s3103_s27  ;;  %s3668_s15 = smov (!%p391_p9), [#allocation2]  }
  0x17   : > { %v3406_v0 = vld [vmem:[%s4444_s1 + $0x78] sm:$0xff]   ;;  %v3410_v4 = vld [vmem:[%s4444_s1 + $0x70] sm:$0xff]   ;;  %v3414_v8 = vld [vmem:[%s4444_s1 + $0x68] sm:$0xff]   ;;  %s434_s22 = scalar_select %p433_p10, %s3760_s29, 1  ;;  %vm963_vm0 = vcmask 520192   ;;  %vm1069_vm1 = vcmask 523264  }
  0x18   : > { %v3407_v1 = vld [vmem:[%s4444_s1 + $0x38] sm:$0xff]   ;;  %3106 = vmatprep.subr.bf16.mxu0 %v3406_v0  ;;  %v3411_v5 = vld [vmem:[%s4444_s1 + $0x30] sm:$0xff]   ;;  %v3415_v9 = vld [vmem:[%s4444_s1 + $0x28] sm:$0xff]   ;;  %vm3666_vm2 = vmmov 0   ;;  %vm1168_vm3 = vcmask 39936   ;;  %vm1175_vm4 = vcmask 1041408  }
  0x19   : > { %v3408_v2 = vld [vmem:[%s4444_s1 + $0xf8] sm:$0xff]   ;;  %3107 = vmatpush3.bf16.msra.mxu0 %v3407_v1  ;;  %v3412_v6 = vld [vmem:[%s4444_s1 + $0xf0] sm:$0xff]   ;;  %v3416_v10 = vld [vmem:[%s4444_s1 + $0xe8] sm:$0xff]   ;;  %s3362_s21 = smul.u32 48, %s434_s22  ;;  %vm1176_vm5 = vcmask 1042432   ;;  %vm1301_vm6 = vcmask 35840  }
  0x1a   : > { %v3409_v3 = vld [vmem:[%s4444_s1 + $0xb8] sm:$0xff]   ;;  %3128 = vmatprep.subr.bf16.mxu1 %v3408_v2  ;;  %3108 = vmatprep.subr.bf16.mxu0 %v3410_v4  ;;  %v3413_v7 = vld [vmem:[%s4444_s1 + $0xb0] sm:$0xff]   ;;  %v3417_v11 = vld [vmem:[%s4444_s1 + $0xa8] sm:$0xff]   ;;  %vm1394_vm7 = vcmask 162816   ;;  %vm2778_vm12 = vcmask 516096   ;;  %s2808_s22 = sshll.u32 %s432_s17, 4  ;;  %s2809_s22 = int_to_ptr.vmem [resolvable:$true] %s2808_s22 }
  0x1b   : > { %3129 = vmatpush3.bf16.msra.mxu1 %v3409_v3  ;;  %v3418_v12 = vld [vmem:[%s4444_s1 + $0x60] sm:$0xff]   ;;  %v3422_v16 = vld [vmem:[%s4444_s1 + $0x58] sm:$0xff]   ;;  %v3426_v20 = vld [vmem:[%s4444_s1 + $0x50] sm:$0xff]   ;;  %s3879_s14 = scalar_lea.vmem %s4466_s0, %s3362_s21  ;;  %s2796_s0 = scalar_lea.sflag [#allocation3], %s431_s24 }
  0x1c   : > { %3130 = vmatprep.subr.bf16.mxu1 %v3412_v6  ;;  %v3419_v13 = vld [vmem:[%s4444_s1 + $0x20] sm:$0xff]   ;;  %v3423_v17 = vld [vmem:[%s4444_s1 + $0x18] sm:$0xff]   ;;  %v3427_v21 = vld [vmem:[%s4444_s1 + $0x10] sm:$0xff]   ;;  %s3602_s30 = scalar_lea.vmem %s2809_s22, 16  ;;  %s3606_s21 = sshll.u32 %s3668_s15, 4  ;;  %s3607_s21 = int_to_ptr.vmem [resolvable:$false] %s3606_s21 }
  0x1d   : > { %3109 = vmatpush3.bf16.msra.mxu0 %v3411_v5  ;;  %v3420_v14 = vld [vmem:[%s4444_s1 + $0xe0] sm:$0xff]   ;;  %v3424_v18 = vld [vmem:[%s4444_s1 + $0xd8] sm:$0xff]   ;;  %v3428_v22 = vld [vmem:[%s4444_s1 + $0xd0] sm:$0xff]   ;;  %p3603_p11 = scmp.ne.s32.totalorder %s2809_s22, %s3602_s30  ;;  %s3608_s29 = scalar_lea.vmem %s3607_s21, 32 }
  0x1e   : > { %3110 = vmatprep.subr.bf16.mxu0 %v3414_v8  ;;  %v3421_v15 = vld [vmem:[%s4444_s1 + $0xa0] sm:$0xff]   ;;  %v3425_v19 = vld [vmem:[%s4444_s1 + $0x98] sm:$0xff]   ;;  %v3429_v23 = vld [vmem:[%s4444_s1 + $0x90] sm:$0xff]   ;;  %p3609_p0 = scmp.lt.s32.totalorder %s2809_s22, %s3607_s21  ;;  %p3610_p1 = scmp.lt.s32.totalorder %s3608_s29, %s3602_s30 }
  0x1f   : > { %3131 = vmatpush3.bf16.msra.mxu1 %v3413_v7  ;;  %v3430_v24 = vld [vmem:[%s4444_s1 + $0x48] sm:$0xff]   ;;  %v3434_v28 = vld [vmem:[%s4444_s1 + $0x40] sm:$0xff]   ;;  %v3438_v36 = vld [vmem:[%s4444_s1 + $0x178] sm:$0xff]   ;;  %p3604_p12 = pnand %p3603_p11, %p3777_p5 }
  0x20   : > { %3132 = vmatprep.subr.bf16.mxu1 %v3416_v10  ;;  %v3431_v25 = vld [vmem:[%s4444_s1 + $0x8] sm:$0xff]   ;;  %v3435_v29 = vld [vmem:[%s4444_s1] sm:$0xff]   ;;  %v442_v37 = vld [vmem:[%s3879_s14 + $0x18] sm:$0x1f]  ;;  %p3611_p2 = por %p3610_p1, %p3609_p0 }
  0x21   : > { %3111 = vmatpush3.bf16.msra.mxu0 %v3415_v9  ;;  %v3432_v26 = vld [vmem:[%s4444_s1 + $0xc8] sm:$0xff]   ;;  %v3436_v30 = vld [vmem:[%s4444_s1 + $0xc0] sm:$0xff]   ;;  %v448_v38 = vpack.c.bf16 %v442_v37, %v442_v37  ;;  %v3439_v39 = vld [vmem:[%s4444_s1 + $0x138] sm:$0xff]   ;;  %p3605_p13 = pneg %p3604_p12 }
  0x22   : > { %3112 = vmatprep.subr.bf16.mxu0 %v3418_v12  ;;  %v3433_v27 = vld [vmem:[%s4444_s1 + $0x88] sm:$0xff]   ;;  %v3437_v33 = vld [vmem:[%s4444_s1 + $0x80] sm:$0xff]   ;;  %v441_v40 = vld [vmem:[%s3879_s14 + $0x10] sm:$0x1f] }
  0x23   : > { %3133 = vmatpush3.bf16.msra.mxu1 %v3417_v11  ;;  %v440_v31 = vld [vmem:[%s3879_s14 + $0x8] sm:$0x1f]  ;;  %v439_v34 = vld [vmem:[%s3879_s14] sm:$0x1f]  ;;  %908 = vmatprep.mubr.bf16.mxu1 %v448_v38  ;;  %v447_v41 = vpack.c.bf16 %v441_v40, %v441_v40  ;;  %v3440_v42 = vld [vmem:[%s4444_s1 + $0x170] sm:$0xff]   ;;  %p3612_p3 = pnand %p3611_p2, %p3605_p13 }
  0x24   : > { %3134 = vmatprep.subr.bf16.mxu1 %v3420_v14  ;;  %v446_v32 = vpack.c.bf16 %v440_v31, %v440_v31  ;;  %v445_v35 = vpack.c.bf16 %v439_v34, %v439_v34  ;;  %v3441_v43 = vld [vmem:[%s4444_s1 + $0x130] sm:$0xff]   ;;  %v3442_v44 = vld [vmem:[%s4444_s1 + $0x168] sm:$0xff]   ;;  %v3444_v46 = vld [vmem:[%s4444_s1 + $0x160] sm:$0xff]  }
  0x25   : > { %3113 = vmatpush3.bf16.msra.mxu0 %v3419_v13  ;;  %v3443_v45 = vld [vmem:[%s4444_s1 + $0x128] sm:$0xff]   ;;  %v3445_v47 = vld [vmem:[%s4444_s1 + $0x120] sm:$0xff]   ;;  %v3446_v48 = vld [vmem:[%s4444_s1 + $0x158] sm:$0xff]  }
  0x26   : > { %3114 = vmatprep.subr.bf16.mxu0 %v3422_v16  ;;  %868 = vmatprep.mubr.bf16.mxu0 %v446_v32  ;;  %v3447_v49 = vld [vmem:[%s4444_s1 + $0x118] sm:$0xff]   ;;  %v3448_v50 = vld [vmem:[%s4444_s1 + $0x150] sm:$0xff]   ;;  %v444_v51 = vld [vmem:[%s3879_s14 + $0x28] sm:$0x1f] }
  0x27   : > { %3135 = vmatpush3.bf16.msra.mxu1 %v3421_v15  ;;  %v3449_v52 = vld [vmem:[%s4444_s1 + $0x110] sm:$0xff]   ;;  %v450_v53 = vpack.c.bf16 %v444_v51, %v444_v51  ;;  %v3450_v54 = vld [vmem:[%s4444_s1 + $0x148] sm:$0xff]   ;;  %v3452_v56 = vld [vmem:[%s4444_s1 + $0x140] sm:$0xff]  }
  0x28   : > { %3136 = vmatprep.subr.bf16.mxu1 %v3424_v18  ;;  %v3451_v55 = vld [vmem:[%s4444_s1 + $0x108] sm:$0xff]   ;;  %v3453_v57 = vld [vmem:[%s4444_s1 + $0x100] sm:$0xff]   ;;  %v3466_v40 = vld [vmem:[%s4445_s2 + $0x50] ss:$12 sps:$4 sm:$0xff]  }
  0x29   : > { %3115 = vmatpush3.bf16.msra.mxu0 %v3423_v17  ;;  %v443_v58 = vld [vmem:[%s3879_s14 + $0x20] sm:$0x1f] }
  0x2a   : > { %3116 = vmatprep.subr.bf16.mxu0 %v3426_v20  ;;  %v449_v59 = vpack.c.bf16 %v443_v58, %v443_v58  ;;  %v547_v5 = vld [vmem:[%s4451_s8] sm:$0x1f] }
  0x2b   : > { %3137 = vmatpush3.bf16.msra.mxu1 %v3425_v19  ;;  %v2917_v37 = vld [vmem:[%s4449_s6 + $0x1] ss:$0 sm:$0xff] }
  0x2c   : > { %3138 = vmatprep.subr.bf16.mxu1 %v3428_v22  ;;  %v3454_v22 = vld [vmem:[%s4445_s2 + $0x48] ss:$12 sps:$4 sm:$0xff]  }
  0x2d   : > { %3117 = vmatpush3.bf16.msra.mxu0 %v3427_v21  ;;  %v3456_v21 = vld [vmem:[%s4445_s2 + $0x4c] ss:$12 sps:$4 sm:$0xff]  }
  0x2e   : > { %3118 = vmatprep.subr.bf16.mxu0 %v3430_v24  ;;  %v3457_v24 = vld [vmem:[%s4445_s2 + $0x30] ss:$12 sps:$4 sm:$0xff]  }
  0x2f   : > { %3139 = vmatpush3.bf16.msra.mxu1 %v3429_v23  ;;  %v3459_v23 = vld [vmem:[%s4445_s2 + $0x34] ss:$12 sps:$4 sm:$0xff]  }
  0x30   : > { %3140 = vmatprep.subr.bf16.mxu1 %v3432_v26  ;;  %v3460_v26 = vld [vmem:[%s4445_s2 + $0x18] ss:$12 sps:$4 sm:$0xff]  }
  0x31   : > { %3119 = vmatpush3.bf16.msra.mxu0 %v3431_v25  ;;  %v3462_v25 = vld [vmem:[%s4445_s2 + $0x1c] ss:$12 sps:$4 sm:$0xff]  }
  0x32   : > { %3120 = vmatprep.subr.bf16.mxu0 %v3434_v28  ;;  %v3463_v28 = vld [vmem:[%s4445_s2] ss:$12 sps:$4 sm:$0xff]  }
  0x33   : > { %3141 = vmatpush3.bf16.msra.mxu1 %v3433_v27  ;;  %v3465_v27 = vld [vmem:[%s4445_s2 + $0x4] ss:$12 sps:$4 sm:$0xff]  }
  0x34   : > { %3142 = vmatprep.subr.bf16.mxu1 %v3436_v30  ;;  %v3665_v30 = vmov 0.0  }
  0x35   : > { %3121 = vmatpush3.bf16.msra.mxu0 %v3435_v29  ;;  %v3664_v29 = vmov 0  }
  0x36   : > { %3150 = vmatprep.subr.bf16.mxu0 %v3438_v36 }
  0x37   : > { %3143 = vmatpush3.bf16.msra.mxu1 %v3437_v33 }
  0x38   : > { %869 = vmatmul.mubr.bf16.vlgmr.msra.gmra.mxu0 %v445_v35  ;;  %1081 = vmatprep.subr.bf16.mxu1 %v3456_v21  ;;  %v2916_v35 = vld [vmem:[%s4449_s6] ss:$0 sm:$0xff] }
  0x39   : > { %3151 = vmatpush3.bf16.msra.mxu0 %v3439_v39  ;;  %948 = vmatprep.mubr.bf16.mxu0 %v450_v53 }
  0x3a   : > { %909 = vmatmul.mubr.bf16.vlgmr.msra.gmra.mxu1 %v447_v41  ;;  %3152 = vmatprep.subr.bf16.mxu0 %v3440_v42  ;;  %v3467_v42 = vld [vmem:[%s4445_s2 + $0x38] ss:$12 sps:$4 sm:$0xff]  }
  0x3b   : > { %1082 = vmatpush1.bf16.msra.mxu1 %v3454_v22  ;;  %1105 = vmatprep.mubr.bf16.mxu1 %v3664_v29 }
  0x3c   : > { %1083 = vmatprep.subr.bf16.mxu1 %v3459_v23 }
  0x3d   : > { %3153 = vmatpush3.bf16.msra.mxu0 %v3441_v43  ;;  %v3468_v43 = vld [vmem:[%s4445_s2 + $0x20] ss:$12 sps:$4 sm:$0xff]  }
  0x3e   : > { %3154 = vmatprep.subr.bf16.mxu0 %v3442_v44  ;;  %v3469_v44 = vld [vmem:[%s4445_s2 + $0x8] ss:$12 sps:$4 sm:$0xff]  }
  0x3f   : > { %1084 = vmatpush1.bf16.msra.mxu1 %v3457_v24 }
  0x40   : > { %1085 = vmatprep.subr.bf16.mxu1 %v3462_v25 }
  0x41   : > { %3155 = vmatpush3.bf16.msra.mxu0 %v3443_v45  ;;  %v4007_v45 = vld [vmem:[%s4453_s10] sm:$0xff]  }
  0x42   : > { %3156 = vmatprep.subr.bf16.mxu0 %v3444_v46  ;;  %v3667_v46 = vmov 65535  }
  0x43   : > { %1086 = vmatpush1.bf16.msra.mxu1 %v3460_v26 }
  0x44   : > { %1087 = vmatprep.subr.bf16.mxu1 %v3465_v27 }
  0x45   : > { %3157 = vmatpush3.bf16.msra.mxu0 %v3445_v47  ;;  %v1177_v47 = vsel %vm1175_vm4, 4294967295, %v3667_v46 }
  0x46   : > { %3158 = vmatprep.subr.bf16.mxu0 %v3446_v48 }
  0x47   : > { %1088 = vmatpush1.bf16.msra.mxu1 %v3463_v28 }
  0x48   : > { %3260 = vmatprep.subr.bf16.mxu1 %v3665_v30 }
  0x49   : > { %3159 = vmatpush3.bf16.msra.mxu0 %v3447_v49  ;;  %v4012_v49 = vsel %vm1176_vm5, %v1177_v47, 0 }
  0x4a   : > { %3160 = vmatprep.subr.bf16.mxu0 %v3448_v50 }
  0x4d   : > { %3161 = vmatpush3.bf16.msra.mxu0 %v3449_v52 }
  0x4e   : > { %3162 = vmatprep.subr.bf16.mxu0 %v3450_v54 }
  0x51   : > { %3163 = vmatpush3.bf16.msra.mxu0 %v3451_v55 }
  0x52   : > { %3164 = vmatprep.subr.bf16.mxu0 %v3452_v56  ;;  %v4020_v56 = vld [vmem:[%s4453_s10 + $0x8] ss:$0 sps:$4 sm:$0x33]  }
  0x55   : > { %3165 = vmatpush3.bf16.msra.mxu0 %v3453_v57 }
  0x58   : > { %949 = vmatmul.mubr.bf16.vlgmr.msra.gmra.mxu0 %v449_v59 }
  0x59   : > { %3274 = vmatprep.mubr.msk.bf16.mxu0 %vm1168_vm3, %v4007_v45 }
  0xf8   : > { %v3122_v60 = vpop.f32.mrf.mxu0 }
  0xfa   : > { %v3123_v61 = vpop.f32.mrf.mxu0  ;;  %v3144_v62 = vpop.f32.mrf.mxu1 }
  0xfb   : > { %v3124_v4 = vadd.f32 %v3123_v61, %v3122_v60 }
  0xfc   : > { %v3125_v63 = vpop.f32.mrf.mxu0  ;;  %v3145_v0 = vpop.f32.mrf.mxu1 }
  0xfd   : > { %v871_v6 = vadd.f32 %v3124_v4, %v547_v5  ;;  %v3146_v7 = vadd.f32 %v3145_v0, %v3144_v62  ;;  %v4039_v5 = vld [vmem:[%s4452_s9 + $0x8] sm:$0xff] }
  0xfe   : > { %v3126_v1 = vpop.f32.mrf.mxu0  ;;  %v3147_v2 = vpop.f32.mrf.mxu1 }
  0xff   : > { %v911_v10 = vadd.f32 %v3146_v7, %v871_v6  ;;  %v4029_v2 = vld [vmem:[%s4452_s9 + $0x10] sm:$0xf] }
 0x100   : > { %v3148_v3 = vpop.f32.mrf.mxu1 }
 0x101   : > { %v4034_v3 = vld [vmem:[%s4452_s9] sm:$0xff] }
 0x118   : > { %v3166_v8 = vpop.f32.mrf.mxu0 }
 0x11a   : > { %v3167_v9 = vpop.f32.mrf.mxu0 }
 0x11b   : > { %v3168_v11 = vadd.f32 %v3167_v9, %v3166_v8 }
 0x11c   : > { %v3169_v12 = vpop.f32.mrf.mxu0 }
 0x11d   : > { %v3947_v13 = vadd.f32 %v3168_v11, %v911_v10 }
 0x11e   : > { %v3170_v14 = vpop.f32.mrf.mxu0 }
 0x11f   : > { %v964_v15 = vsel %vm963_vm0, %v3947_v13, 0.0 }
 0x120   : > { %965 = vadd.xlane.f32.xlu0 %v964_v15 }
 0x1a9   : > { %v966_v16 = vpop.xlane.xlu0 %965 }
 0x1aa   : > { %v968_v17 = vmul.f32 0.015625, %v966_v16 }
 0x1ac   : > { %v969_v18 = vsub.f32 %v3947_v13, %v968_v17 }
 0x1ae   : > { %v970_v19 = vmul.f32 %v969_v18, %v969_v18 }
 0x1b0   : > { %v971_v20 = vsel %vm963_vm0, %v970_v19, 0.0 }
 0x1b1   : > { %972 = vadd.xlane.f32.xlu0 %v971_v20 }
 0x23a   : > { %v973_v31 = vpop.xlane.xlu0 %972 }
 0x23b   : > { %v974_v32 = vmul.f32 0.015625, %v973_v31 }
 0x23d   : > { %v975_v33 = vadd.f32 1e-05, %v974_v32 }
 0x23f   : > { %3552 = vrsqrt.f32 %v975_v33 }
 0x24c   : > { %v3553_v34 = vpop.eup %3552 }
 0x24d   : > { %v977_v36 = vmul.f32 %v3553_v34, %v969_v18 }
 0x24f   : > { %v982_v38 = vmul.f32 %v2916_v35, %v977_v36 }
 0x251   : > { %v987_v39 = vadd.f32 %v2917_v37, %v982_v38 }
 0x253   : > { %v988_v41 = vpack.c.bf16 %v987_v39, %v987_v39 }
 0x255   : > { %2930 = vmatmul.mubr.msk.bf16.vlgmr.msra.gmra.mxu1 %vm1069_vm1, %v988_v41 }
 0x256   : > { %3261 = vmatpush3.bf16.msra.mxu1 %v3466_v40  ;;  %3268 = vmatprep.mubr.msk.bf16.mxu1 %vm3666_vm2, %v3665_v30 }
 0x257   : > { %3262 = vmatprep.subr.bf16.mxu1 %v3665_v30 }
 0x25a   : > { %3263 = vmatpush3.bf16.msra.mxu1 %v3467_v42 }
 0x25b   : > { %3264 = vmatprep.subr.bf16.mxu1 %v3665_v30 }
 0x25e   : > { %3265 = vmatpush3.bf16.msra.mxu1 %v3468_v43 }
 0x25f   : > { %3266 = vmatprep.subr.bf16.mxu1 %v3665_v30 }
 0x262   : > { %3267 = vmatpush3.bf16.msra.mxu1 %v3469_v44 }
 0x265   : > { %3269 = vmatmul.mubr.msk.bf16.vlgmr.msra.gmra.mxu1 %vm1069_vm1, %v988_v41 }
 0x315   : > { %v1107_v48 = vpop.f32.mrf.mxu1 }
 0x316   : > { %v1159_v50 = vpack.c.bf16 %v1107_v48, %v1107_v48 }
 0x317   : > { %v1109_v51 = vpop.f32.mrf.mxu1 }
 0x318   : > { %v1180_v52 = vand.u32 %v4012_v49, %v1159_v50  ;;  %v1154_v53 = vpack.c.bf16 %v1109_v51, %v1109_v51 }
 0x319   : > { %v1111_v54 = vpop.f32.mrf.mxu1 }
 0x31a   : > { %v1245_v55 = vsel %vm1069_vm1, %v1154_v53, 0  ;;  %3272 = vmatprep.subr.bf16.mxu0 %v1180_v52  ;;  %3360 = vmatprep.subr.msk.bf16.mxu1 %vm1069_vm1, %v1154_v53 }
 0x31b   : > { %v1112_v57 = vpop.f32.mrf.mxu1  ;;  %3273 = vmatpush3.bf16.msra.mxu0 %v1180_v52  ;;  %3279 = vmatpush3.bf16.xpose.msra.mxu1 %v1245_v55 }
 0x31c   : > { %3290 = vmatprep.subr.bf16.mxu1 %v3665_v30 }
 0x31e   : > { %3275 = vmatmul.mubr.msk.bf16.vlgmr.msra.gmra.mxu0 %vm1168_vm3, %v4020_v56 }
 0x325   : > { %v1148_v58 = vpop.f32.mrf.mxu1 }
 0x326   : > { %v1155_v59 = vpack.c.bf16 %v1148_v58, %v1148_v58 }
 0x327   : > { %v3270_v60 = vpop.f32.mrf.mxu1 }
 0x328   : > { %v1338_v61 = vand.u32 %v4012_v49, %v1155_v59 }
 0x329   : > { %v1151_v62 = vpop.f32.mrf.mxu1 }
 0x32a   : > { %3284 = vmatprep.subr.bf16.mxu0 %v1338_v61  ;;  %v3472_v62 = vld [vmem:[%s4446_s3 + $0x18] sm:$0xff]  }
 0x32b   : > { %v3271_v63 = vpop.f32.mrf.mxu1  ;;  %3285 = vmatpush3.bf16.msra.mxu0 %v1338_v61  ;;  %v4064_v61 = vld [vmem:[%s4454_s11] sm:$0x7] }
 0x32c   : > { %v3473_v63 = vld [vmem:[%s4446_s3 + $0x10] sm:$0xff]  }
 0x3de   : > { %v3276_v0 = vpop.f32.mrf.mxu0 }
 0x3df   : > { %v1235_v6 = vmul.f32 %v3276_v0, %v4029_v2  ;;  %v3474_v0 = vld [vmem:[%s4446_s3 + $0x8] sm:$0xff]  }
 0x3e0   : > { %v1216_v1 = vpop.f32.mrf.mxu0 }
 0x3e1   : > { %v1233_v8 = vmul.f32 %v4034_v3, %v1216_v1  ;;  %v1237_v11 = vpack.c.bf16 %v1235_v6, %v1235_v6  ;;  %v3475_v1 = vld [vmem:[%s4446_s3] sm:$0xff]  }
 0x3e2   : > { %v3277_v4 = vpop.f32.mrf.mxu0 }
 0x3e4   : > { %v1219_v7 = vpop.f32.mrf.mxu0 }
 0x3e5   : > { %v1234_v9 = vmul.f32 %v4039_v5, %v1219_v7 }
 0x3e7   : > { %v1236_v10 = vpack.c.bf16 %v1234_v9, %v1233_v8 }
 0x3e9   : > { %3280 = vmatprep.mubr.msk.bf16.mxu1 %vm1069_vm1, %v1236_v10  ;;  %v2946_v10 = vld [vmem:[%s4449_s6 + $0x2] ss:$0 sm:$0xff] }
 0x3ea   : > { %3281 = vmatmul.mubr.msk.bf16.vlgmr.msra.gmra.mxu1 %vm1069_vm1, %v1237_v11 }
 0x3eb   : > { %3294 = vmatprep.mubr.msk.bf16.mxu1 %vm3666_vm2, %v3665_v30 }
 0x4aa   : > { %v3282_v12 = vpop.f32.mrf.mxu1 }
 0x4ab   : > { %v1302_v14 = vsel %vm1301_vm6, %v3282_v12, -inf }
 0x4ac   : > { %1303 = vmax.xlane.f32.xlu0 %v1302_v14  ;;  %v1281_v15 = vpop.f32.mrf.mxu1 }
 0x4ad   : > { %v1295_v16 = vsel %vm1168_vm3, %v1281_v15, -inf }
 0x4ae   : > { %1296 = vmax.xlane.f32.xlu1 %v1295_v16  ;;  %v3283_v17 = vpop.f32.mrf.mxu1 }
 0x4b0   : > { %v1284_v18 = vpop.f32.mrf.mxu1 }
 0x4b1   : > { %v1298_v19 = vsel %vm1168_vm3, %v1284_v18, -inf }
 0x4b2   : > { %1299 = vmax.xlane.f32.xlu1 %v1298_v19 }
 0x535   : > { %v1304_v20 = vpop.xlane.xlu0 %1303 }
 0x536   : > { %v1307_v21 = vsub.f32 %v3282_v12, %v1304_v20 }
 0x537   : > { %v1297_v22 = vpop.xlane.xlu1 %1296 }
 0x538   : > { %v1305_v23 = vsub.f32 %v1281_v15, %v1297_v22  ;;  %v1312_v24 = vmul.f32 1.442695, %v1307_v21 }
 0x53a   : > { %v1308_v25 = vmul.f32 1.442695, %v1305_v23 }
 0x53b   : > { %v1300_v26 = vpop.xlane.xlu1 %1299 }
 0x53c   : > { %3554 = vpow2.f32 %v1308_v25  ;;  %v1306_v27 = vsub.f32 %v1284_v18, %v1300_v26  ;;  %v3481_v25 = vld [vmem:[%s4447_s4 + $0x24] ss:$8 sps:$4 sm:$0xff]   ;;  %v3479_v26 = vld [vmem:[%s4447_s4 + $0x20] ss:$8 sps:$4 sm:$0xff]  }
 0x53d   : > { %3556 = vpow2.f32 %v1312_v24  ;;  %v3476_v24 = vld [vmem:[%s4447_s4 + $0x30] ss:$8 sps:$4 sm:$0xff]  }
 0x53e   : > { %v1310_v28 = vmul.f32 1.442695, %v1306_v27  ;;  %v3484_v27 = vld [vmem:[%s4447_s4 + $0x14] ss:$8 sps:$4 sm:$0xff]  }
 0x540   : > { %3558 = vpow2.f32 %v1310_v28  ;;  %v3482_v28 = vld [vmem:[%s4447_s4 + $0x10] ss:$8 sps:$4 sm:$0xff]  }
 0x549   : > { %v3555_v31 = vpop.eup %3554 }
 0x54a   : > { %v1314_v32 = vsel %vm1168_vm3, %v3555_v31, 0.0  ;;  %v3557_v33 = vpop.eup %3556 }
 0x54b   : > { %1315 = vadd.xlane.f32.xlu1 %v1314_v32  ;;  %v1320_v35 = vsel %vm1301_vm6, %v3557_v33, 0.0  ;;  %v3485_v32 = vld [vmem:[%s4447_s4] ss:$8 sps:$4 sm:$0xff]  }
 0x54d   : > { %v3559_v34 = vpop.eup %3558 }
 0x54e   : > { %v1317_v36 = vsel %vm1168_vm3, %v3559_v34, 0.0 }
 0x54f   : > { %1321 = vadd.xlane.f32.xlu1 %v1320_v35  ;;  %1318 = vadd.xlane.f32.xlu0 %v1317_v36 }
 0x5d4   : > { %v1316_v37 = vpop.xlane.xlu1 %1315 }
 0x5d5   : > { %3560 = vrcp.f32 %v1316_v37  ;;  %v2947_v37 = vld [vmem:[%s4449_s6 + $0x3] ss:$0 sm:$0xff] }
 0x5d8   : > { %v1319_v38 = vpop.xlane.xlu0 %1318  ;;  %v1322_v39 = vpop.xlane.xlu1 %1321 }
 0x5d9   : > { %3562 = vrcp.f32 %v1319_v38 }
 0x5da   : > { %3564 = vrcp.f32 %v1322_v39  ;;  %v2948_v39 = vld [vmem:[%s4449_s6 + $0x4] ss:$0 sm:$0xff] }
 0x5e2   : > { %v3561_v40 = vpop.eup %3560 }
 0x5e3   : > { %v1326_v43 = vmul.f32 %v3561_v40, %v3555_v31  ;;  %v3487_v31 = vld [vmem:[%s4447_s4 + $0x4] ss:$8 sps:$4 sm:$0xff]  }
 0x5e6   : > { %v3563_v41 = vpop.eup %3562 }
 0x5e7   : > { %v3565_v42 = vpop.eup %3564  ;;  %v1327_v44 = vmul.f32 %v3563_v41, %v3559_v34 }
 0x5e8   : > { %v1328_v46 = vmul.f32 %v3565_v42, %v3557_v33 }
 0x5e9   : > { %v1329_v47 = vpack.c.bf16 %v1327_v44, %v1326_v43  ;;  %v3488_v43 = vld [vmem:[%s4448_s5 + $0x78] sm:$0xff]  }
 0x5ea   : > { %v1330_v48 = vpack.c.bf16 %v1328_v46, %v1328_v46  ;;  %v3489_v44 = vld [vmem:[%s4448_s5 + $0x38] sm:$0xff]   ;;  %3194 = vmatprep.subr.bf16.mxu0 %v3488_v43  ;;  %v3490_v46 = vld [vmem:[%s4448_s5 + $0x70] sm:$0xff]  }
 0x5eb   : > { %3286 = vmatprep.mubr.msk.bf16.mxu0 %vm1168_vm3, %v1329_v47  ;;  %v3491_v47 = vld [vmem:[%s4448_s5 + $0x30] sm:$0xff]  }
 0x5ec   : > { %3287 = vmatmul.mubr.msk.bf16.vlgmr.msra.gmra.mxu0 %vm1168_vm3, %v1330_v48  ;;  %v3492_v48 = vld [vmem:[%s4448_s5 + $0x68] sm:$0xff]  }
 0x5ed   : > { %3195 = vmatpush3.bf16.msra.mxu0 %v3489_v44 }
 0x5ee   : > { %3196 = vmatprep.subr.bf16.mxu0 %v3490_v46 }
 0x5f1   : > { %3197 = vmatpush3.bf16.msra.mxu0 %v3491_v47 }
 0x5f2   : > { %3198 = vmatprep.subr.bf16.mxu0 %v3492_v48 }
 0x6ac   : > { %v3288_v50 = vpop.f32.mrf.mxu0 }
 0x6ad   : > { %v1390_v51 = vmul.f32 %v3288_v50, %v4029_v2  ;;  %v3493_v50 = vld [vmem:[%s4448_s5 + $0x28] sm:$0xff]  }
 0x6ae   : > { %v1374_v52 = vpop.f32.mrf.mxu0  ;;  %3199 = vmatpush3.bf16.msra.mxu0 %v3493_v50 }
 0x6af   : > { %v1393_v53 = vpack.c.bf16 %v1390_v51, %v1390_v51  ;;  %v1388_v58 = vmul.f32 %v1374_v52, %v4034_v3  ;;  %v3494_v51 = vld [vmem:[%s4448_s5 + $0x60] sm:$0xff]  }
 0x6b0   : > { %v3289_v54 = vpop.f32.mrf.mxu0  ;;  %v3495_v52 = vld [vmem:[%s4448_s5 + $0x20] sm:$0xff]   ;;  %3200 = vmatprep.subr.bf16.mxu0 %v3494_v51 }
 0x6b1   : > { %v1399_v55 = vsel %vm1175_vm4, %v1393_v53, 0  ;;  %v3496_v53 = vld [vmem:[%s4448_s5 + $0x58] sm:$0xff]  }
 0x6b2   : > { %v1377_v57 = vpop.f32.mrf.mxu0  ;;  %3291 = vmatpush3.bf16.msra.mxu1 %v1399_v55  ;;  %3201 = vmatpush3.bf16.msra.mxu0 %v3495_v52  ;;  %v3497_v54 = vld [vmem:[%s4448_s5 + $0x18] sm:$0xff]   ;;  %v3498_v55 = vld [vmem:[%s4448_s5 + $0x50] sm:$0xff]  }
 0x6b3   : > { %v1389_v59 = vmul.f32 %v1377_v57, %v4039_v5  ;;  %3292 = vmatprep.subr.bf16.mxu1 %v3665_v30  ;;  %3202 = vmatprep.subr.bf16.mxu0 %v3496_v53  ;;  %v3499_v57 = vld [vmem:[%s4448_s5 + $0x10] sm:$0xff]  }
 0x6b5   : > { %v1392_v60 = vpack.c.bf16 %v1389_v59, %v1388_v58  ;;  %v3500_v58 = vld [vmem:[%s4448_s5 + $0x48] sm:$0xff]  }
 0x6b6   : > { %3203 = vmatpush3.bf16.msra.mxu0 %v3497_v54  ;;  %v3501_v59 = vld [vmem:[%s4448_s5 + $0x8] sm:$0xff]  }
 0x6b7   : > { %3293 = vmatpush3.bf16.msra.mxu1 %v1392_v60  ;;  %3204 = vmatprep.subr.bf16.mxu0 %v3498_v55  ;;  %v3502_v60 = vld [vmem:[%s4448_s5 + $0x40] sm:$0xff]  }
 0x6b8   : > { %3298 = vmatprep.subr.bf16.mxu1 %v3665_v30 }
 0x6ba   : > { %3295 = vmatmul.mubr.msk.bf16.vlgmr.msra.gmra.mxu1 %vm1394_vm7, %v4064_v61  ;;  %3205 = vmatpush3.bf16.msra.mxu0 %v3499_v57 }
 0x6bb   : > { %3299 = vmatpush3.bf16.msra.mxu1 %v3472_v62  ;;  %3306 = vmatprep.mubr.msk.bf16.mxu1 %vm3666_vm2, %v3665_v30  ;;  %v3503_v62 = vld [vmem:[%s4448_s5] sm:$0xff]  }
 0x6bc   : > { %3300 = vmatprep.subr.bf16.mxu1 %v3665_v30  ;;  %3206 = vmatprep.subr.bf16.mxu0 %v3500_v58 }
 0x6be   : > { %3207 = vmatpush3.bf16.msra.mxu0 %v3501_v59 }
 0x6bf   : > { %3301 = vmatpush3.bf16.msra.mxu1 %v3473_v63  ;;  %3208 = vmatprep.subr.bf16.mxu0 %v3502_v60  ;;  %v1556_v63 = vlaneseq }
 0x6c0   : > { %3302 = vmatprep.subr.bf16.mxu1 %v3665_v30 }
 0x6c2   : > { %3209 = vmatpush3.bf16.msra.mxu0 %v3503_v62 }
 0x6c3   : > { %3303 = vmatpush3.bf16.msra.mxu1 %v3474_v0  ;;  %v4178_v0 = vshrl.u32 %v1556_v63, 7 }
 0x6c4   : > { %3304 = vmatprep.subr.bf16.mxu1 %v3665_v30 }
 0x6c7   : > { %3305 = vmatpush3.bf16.msra.mxu1 %v3475_v1  ;;  %v1558_v1 = vsub.s32 0, %v4178_v0 }
 0x77a   : > { %v1435_v4 = vpop.f32.mrf.mxu1 }
 0x77b   : > { %v1441_v6 = vpack.c.bf16 %v1435_v4, %v1435_v4  ;;  %v962_v4 = vld [vmem:[%s4450_s7] sm:$0x3] }
 0x77c   : > { %v3296_v7 = vpop.f32.mrf.mxu1 }
 0x77d   : > { %3307 = vmatmul.mubr.msk.bf16.vlgmr.msra.gmra.mxu1 %vm1069_vm1, %v1441_v6  ;;  %v1562_v6 = vsub.s32 1, %v4178_v0  ;;  %v1559_v7 = vrot.slane %v962_v4, %v1558_v1 }
 0x77e   : > { %v1438_v8 = vpop.f32.mrf.mxu1  ;;  %1641 = vmatprep.mubr.bf16.mxu1 %v3664_v29 }
 0x77f   : > { %v1563_v8 = vrot.slane %v962_v4, %v1562_v6 }
 0x780   : > { %v3297_v9 = vpop.f32.mrf.mxu1 }
 0x83d   : > { %v1511_v11 = vpop.f32.mrf.mxu1 }
 0x83e   : > { %v1517_v12 = vadd.f32 %v1511_v11, %v3947_v13  ;;  %v3478_v13 = vld [vmem:[%s4447_s4 + $0x34] ss:$8 sps:$4 sm:$0xff]  }
 0x83f   : > { %v3308_v14 = vpop.f32.mrf.mxu1  ;;  %1617 = vmatprep.subr.bf16.mxu1 %v3478_v13 }
 0x840   : > { %v4092_v15 = vadd.f32 %v2946_v10, %v1517_v12  ;;  %1618 = vmatpush1.bf16.msra.mxu1 %v3476_v24 }
 0x841   : > { %v1514_v16 = vpop.f32.mrf.mxu1  ;;  %1619 = vmatprep.subr.bf16.mxu1 %v3481_v25 }
 0x842   : > { %v1523_v17 = vsel %vm963_vm0, %v4092_v15, 0.0 }
 0x843   : > { %1524 = vadd.xlane.f32.xlu0 %v1523_v17  ;;  %v3309_v18 = vpop.f32.mrf.mxu1 }
 0x844   : > { %1620 = vmatpush1.bf16.msra.mxu1 %v3479_v26 }
 0x845   : > { %1621 = vmatprep.subr.bf16.mxu1 %v3484_v27 }
 0x848   : > { %1622 = vmatpush1.bf16.msra.mxu1 %v3482_v28 }
 0x849   : > { %1623 = vmatprep.subr.bf16.mxu1 %v3487_v31 }
 0x84c   : > { %1624 = vmatpush1.bf16.msra.mxu1 %v3485_v32 }
 0x8cc   : > { %v1525_v19 = vpop.xlane.xlu0 %1524 }
 0x8cd   : > { %v1526_v20 = vmul.f32 0.015625, %v1525_v19 }
 0x8cf   : > { %v1527_v21 = vsub.f32 %v4092_v15, %v1526_v20 }
 0x8d1   : > { %v1528_v22 = vmul.f32 %v1527_v21, %v1527_v21 }
 0x8d3   : > { %v1529_v23 = vsel %vm963_vm0, %v1528_v22, 0.0 }
 0x8d4   : > { %1530 = vadd.xlane.f32.xlu1 %v1529_v23 }
 0x95d   : > { %v1531_v33 = vpop.xlane.xlu1 %1530 }
 0x95e   : > { %v1532_v34 = vmul.f32 0.015625, %v1531_v33 }
 0x960   : > { %v1533_v35 = vadd.f32 1e-05, %v1532_v34 }
 0x962   : > { %3566 = vrsqrt.f32 %v1533_v35 }
 0x96f   : > { %v3567_v36 = vpop.eup %3566 }
 0x970   : > { %v1535_v38 = vmul.f32 %v3567_v36, %v1527_v21 }
 0x972   : > { %v1540_v40 = vmul.f32 %v2947_v37, %v1535_v38 }
 0x974   : > { %v1545_v41 = vadd.f32 %v2948_v39, %v1540_v40 }
 0x976   : > { %v1546_v42 = vpack.c.bf16 %v1545_v41, %v1545_v41 }
 0x978   : > { %2957 = vmatmul.mubr.msk.bf16.vlgmr.msra.gmra.mxu1 %vm1069_vm1, %v1546_v42 }
 0x979   : > { %2029 = vmatprep.mubr.bf16.mxu1 %v3664_v29 }
 0xa38   : > { %v1643_v9 = vpop.f32.mrf.mxu1 }
 0xa39   : > { %v1644_v10 = vadd.f32 %v1643_v9, %v1559_v7 }
 0xa3a   : > { %v1645_v11 = vpop.f32.mrf.mxu1 }
 0xa3b   : > { %v1652_v12 = vmul.f32 0.70710677, %v1644_v10  ;;  %v1646_v14 = vadd.f32 %v1645_v11, %v1563_v8  ;;  %v1650_v8 = vmul.f32 0.5, %v1644_v10 }
 0xa3c   : > { %v1647_v16 = vpop.f32.mrf.mxu1 }
 0xa3d   : > { %v1654_v17 = vand.u32 2147483647, %v1652_v12  ;;  %v1653_v18 = vmul.f32 0.70710677, %v1646_v14  ;;  %vm1694_vm8 = vcmp.ge.f32.partialorder %v1652_v12, 0.0  ;;  %v1651_v11 = vmul.f32 0.5, %v1646_v14 }
 0xa3e   : > { %v1648_v19 = vpop.f32.mrf.mxu1 }
 0xa3f   : > { %v1656_v20 = vmul.f32 0.3275911, %v1654_v17  ;;  %v1655_v21 = vand.u32 2147483647, %v1653_v18  ;;  %v1682_v24 = vsub.f32 0.0, %v1654_v17  ;;  %vm1695_vm9 = vcmp.ge.f32.partialorder %v1653_v18, 0.0 }
 0xa40   : > { %v2974_v18 = vld [vmem:[%s4449_s6 + $0x5] ss:$0 sm:$0xff] }
 0xa41   : > { %v1658_v22 = vadd.f32 1.0, %v1656_v20  ;;  %v1657_v23 = vmul.f32 0.3275911, %v1655_v21  ;;  %v1683_v25 = vsub.f32 0.0, %v1655_v21  ;;  %v1684_v26 = vmul.f32 %v1682_v24, %v1654_v17 }
 0xa43   : > { %3568 = vrcp.f32 %v1658_v22  ;;  %v1659_v13 = vadd.f32 1.0, %v1657_v23  ;;  %v1685_v28 = vmul.f32 %v1683_v25, %v1655_v21  ;;  %v1686_v32 = vmul.f32 1.442695, %v1684_v26 }
 0xa45   : > { %3570 = vrcp.f32 %v1659_v13  ;;  %v1688_v35 = vmul.f32 1.442695, %v1685_v28 }
 0xa46   : > { %3572 = vpow2.f32 %v1686_v32  ;;  %v3506_v32 = vld [vmem:[%s4445_s2 + $0xac] ss:$12 sps:$4 sm:$0xff]  }
 0xa47   : > { %3574 = vpow2.f32 %v1688_v35  ;;  %2005 = vmatprep.subr.bf16.mxu1 %v3506_v32  ;;  %v3512_v35 = vld [vmem:[%s4445_s2 + $0x7c] ss:$12 sps:$4 sm:$0xff]  }
 0xa50   : > { %v3569_v27 = vpop.eup %3568 }
 0xa51   : > { %v1664_v31 = vmul.f32 1.0614054, %v3569_v27 }
 0xa52   : > { %v3571_v33 = vpop.eup %3570 }
 0xa53   : > { %v1666_v34 = vadd.f32 -1.4531521, %v1664_v31  ;;  %v1665_v36 = vmul.f32 1.0614054, %v3571_v33  ;;  %v3573_v52 = vpop.eup %3572 }
 0xa54   : > { %v3575_v57 = vpop.eup %3574 }
 0xa55   : > { %v1668_v37 = vmul.f32 %v3569_v27, %v1666_v34  ;;  %v1667_v38 = vadd.f32 -1.4531521, %v1665_v36  ;;  %v3507_v34 = vld [vmem:[%s4445_s2 + $0x90] ss:$12 sps:$4 sm:$0xff]   ;;  %v3510_v36 = vld [vmem:[%s4445_s2 + $0x78] ss:$12 sps:$4 sm:$0xff]  }
 0xa57   : > { %v1670_v39 = vadd.f32 1.4214138, %v1668_v37  ;;  %v1669_v40 = vmul.f32 %v3571_v33, %v1667_v38  ;;  %v3513_v37 = vld [vmem:[%s4445_s2 + $0x60] ss:$12 sps:$4 sm:$0xff]   ;;  %v3515_v38 = vld [vmem:[%s4445_s2 + $0x64] ss:$12 sps:$4 sm:$0xff]  }
 0xa59   : > { %v1672_v41 = vmul.f32 %v3569_v27, %v1670_v39  ;;  %v1671_v42 = vadd.f32 1.4214138, %v1669_v40 }
 0xa5b   : > { %v1674_v43 = vadd.f32 -0.28449672, %v1672_v41  ;;  %v1673_v44 = vmul.f32 %v3571_v33, %v1671_v42 }
 0xa5d   : > { %v1676_v46 = vmul.f32 %v3569_v27, %v1674_v43  ;;  %v1675_v47 = vadd.f32 -0.28449672, %v1673_v44  ;;  %v2982_v43 = vld [vmem:[%s4449_s6 + $0x8] ss:$0 sm:$0xff] }
 0xa5f   : > { %v1678_v48 = vadd.f32 0.2548296, %v1676_v46  ;;  %v1677_v50 = vmul.f32 %v3571_v33, %v1675_v47  ;;  %v2983_v46 = vld [vmem:[%s4449_s6 + $0x9] ss:$0 sm:$0xff] }
 0xa61   : > { %v1680_v51 = vmul.f32 %v3569_v27, %v1678_v48  ;;  %v1679_v53 = vadd.f32 0.2548296, %v1677_v50  ;;  %v3516_v50 = vld [vmem:[%s4445_s2 + $0xb0] ss:$12 sps:$4 sm:$0xff]  }
 0xa63   : > { %v1690_v54 = vmul.f32 %v3573_v52, %v1680_v51  ;;  %v1681_v55 = vmul.f32 %v3571_v33, %v1679_v53  ;;  %v3509_v33 = vld [vmem:[%s4445_s2 + $0x94] ss:$12 sps:$4 sm:$0xff]   ;;  %v3517_v52 = vld [vmem:[%s4445_s2 + $0x98] ss:$12 sps:$4 sm:$0xff]  }
 0xa64   : > { %v3518_v53 = vld [vmem:[%s4445_s2 + $0x80] ss:$12 sps:$4 sm:$0xff]  }
 0xa65   : > { %v1692_v58 = vsub.f32 1.0, %v1690_v54  ;;  %v1691_v59 = vmul.f32 %v3575_v57, %v1681_v55  ;;  %v3519_v54 = vld [vmem:[%s4445_s2 + $0x68] ss:$12 sps:$4 sm:$0xff]  }
 0xa67   : > { %v1696_v60 = vsub.f32 0.0, %v1692_v58  ;;  %v1693_v62 = vsub.f32 1.0, %v1691_v59 }
 0xa69   : > { %v1698_v63 = vsel %vm1694_vm8, %v1692_v58, %v1696_v60  ;;  %v1697_v7 = vsub.f32 0.0, %v1693_v62 }
 0xa6a   : > { %v1700_v4 = vadd.f32 1.0, %v1698_v63 }
 0xa6b   : > { %v1699_v9 = vsel %vm1695_vm9, %v1693_v62, %v1697_v7 }
 0xa6c   : > { %v1701_v16 = vadd.f32 1.0, %v1699_v9  ;;  %v1702_v17 = vmul.f32 %v1700_v4, %v1650_v8 }
 0xa6e   : > { %v1703_v19 = vmul.f32 %v1701_v16, %v1651_v11  ;;  %v1704_v21 = vpack.c.bf16 %v1702_v17, %v1702_v17 }
 0xa70   : > { %v1705_v20 = vpack.c.bf16 %v1703_v19, %v1703_v19 }
 0xa72   : > { %1866 = vmatprep.mubr.bf16.mxu0 %v1705_v20 }
 0xa73   : > { %1867 = vmatmul.mubr.bf16.vlgmr.msra.gmra.mxu0 %v1704_v21 }
 0xa74   : > { %3324 = vmatprep.mubr.msk.bf16.mxu0 %vm1168_vm3, %v4007_v45 }
 0xb33   : > { %v3210_v22 = vpop.f32.mrf.mxu0 }
 0xb35   : > { %v3211_v12 = vpop.f32.mrf.mxu0 }
 0xb36   : > { %v3212_v23 = vadd.f32 %v3211_v12, %v3210_v22 }
 0xb37   : > { %v3213_v10 = vpop.f32.mrf.mxu0 }
 0xb38   : > { %v1874_v14 = vadd.f32 %v3212_v23, %v4092_v15  ;;  %v3504_v15 = vld [vmem:[%s4445_s2 + $0xa8] ss:$12 sps:$4 sm:$0xff]  }
 0xb39   : > { %v3214_v13 = vpop.f32.mrf.mxu0  ;;  %2006 = vmatpush1.bf16.msra.mxu1 %v3504_v15 }
 0xb3a   : > { %v4195_v24 = vadd.f32 %v2974_v18, %v1874_v14  ;;  %2007 = vmatprep.subr.bf16.mxu1 %v3509_v33 }
 0xb3c   : > { %v1889_v25 = vsel %vm963_vm0, %v4195_v24, 0.0 }
 0xb3d   : > { %1890 = vadd.xlane.f32.xlu0 %v1889_v25  ;;  %2008 = vmatpush1.bf16.msra.mxu1 %v3507_v34 }
 0xb3e   : > { %2009 = vmatprep.subr.bf16.mxu1 %v3512_v35 }
 0xb41   : > { %2010 = vmatpush1.bf16.msra.mxu1 %v3510_v36 }
 0xb42   : > { %2011 = vmatprep.subr.bf16.mxu1 %v3515_v38 }
 0xb45   : > { %2012 = vmatpush1.bf16.msra.mxu1 %v3513_v37 }
 0xb46   : > { %3310 = vmatprep.subr.bf16.mxu1 %v3665_v30 }
 0xbc6   : > { %v1891_v26 = vpop.xlane.xlu0 %1890 }
 0xbc7   : > { %v1892_v27 = vmul.f32 0.015625, %v1891_v26 }
 0xbc9   : > { %v1893_v45 = vsub.f32 %v4195_v24, %v1892_v27 }
 0xbcb   : > { %v1894_v28 = vmul.f32 %v1893_v45, %v1893_v45 }
 0xbcd   : > { %v1895_v31 = vsel %vm963_vm0, %v1894_v28, 0.0 }
 0xbce   : > { %1896 = vadd.xlane.f32.xlu1 %v1895_v31 }
 0xc57   : > { %v1897_v39 = vpop.xlane.xlu1 %1896 }
 0xc58   : > { %v1898_v40 = vmul.f32 0.015625, %v1897_v39 }
 0xc5a   : > { %v1899_v41 = vadd.f32 1e-05, %v1898_v40 }
 0xc5c   : > { %3576 = vrsqrt.f32 %v1899_v41 }
 0xc69   : > { %v3577_v42 = vpop.eup %3576 }
 0xc6a   : > { %v1901_v44 = vmul.f32 %v3577_v42, %v1893_v45 }
 0xc6c   : > { %v1906_v47 = vmul.f32 %v2982_v43, %v1901_v44 }
 0xc6e   : > { %v1911_v48 = vadd.f32 %v2983_v46, %v1906_v47 }
 0xc70   : > { %v1912_v51 = vpack.c.bf16 %v1911_v48, %v1911_v48 }
 0xc72   : > { %3012 = vmatmul.mubr.msk.bf16.vlgmr.msra.gmra.mxu1 %vm1069_vm1, %v1912_v51 }
 0xc73   : > { %3311 = vmatpush3.bf16.msra.mxu1 %v3516_v50  ;;  %3318 = vmatprep.mubr.msk.bf16.mxu1 %vm3666_vm2, %v3665_v30 }
 0xc74   : > { %3312 = vmatprep.subr.bf16.mxu1 %v3665_v30 }
 0xc77   : > { %3313 = vmatpush3.bf16.msra.mxu1 %v3517_v52 }
 0xc78   : > { %3314 = vmatprep.subr.bf16.mxu1 %v3665_v30 }
 0xc7b   : > { %3315 = vmatpush3.bf16.msra.mxu1 %v3518_v53 }
 0xc7c   : > { %3316 = vmatprep.subr.bf16.mxu1 %v3665_v30 }
 0xc7f   : > { %3317 = vmatpush3.bf16.msra.mxu1 %v3519_v54 }
 0xc82   : > { %3319 = vmatmul.mubr.msk.bf16.vlgmr.msra.gmra.mxu1 %vm1069_vm1, %v1912_v51 }
 0xd32   : > { %v2031_v55 = vpop.f32.mrf.mxu1 }
 0xd33   : > { %v2080_v57 = vpack.c.bf16 %v2031_v55, %v2031_v55 }
 0xd34   : > { %v2033_v58 = vpop.f32.mrf.mxu1 }
 0xd35   : > { %v2082_v59 = vand.u32 %v2080_v57, %v4012_v49  ;;  %v2078_v60 = vpack.c.bf16 %v2033_v58, %v2033_v58  ;;  %v3520_v58 = vld [vmem:[%s4446_s3 + $0x38] sm:$0xff]  }
 0xd36   : > { %v2035_v62 = vpop.f32.mrf.mxu1 }
 0xd37   : > { %v2144_v63 = vsel %vm1069_vm1, %v2078_v60, 0  ;;  %3322 = vmatprep.subr.bf16.mxu0 %v2082_v59  ;;  %3361 = vmatprep.subr.msk.bf16.mxu1 %vm1069_vm1, %v2078_v60  ;;  %v3522_v60 = vld [vmem:[%s4446_s3 + $0x28] sm:$0xff]  }
 0xd38   : > { %v2036_v4 = vpop.f32.mrf.mxu1  ;;  %3323 = vmatpush3.bf16.msra.mxu0 %v2082_v59  ;;  %3329 = vmatpush3.bf16.xpose.msra.mxu1 %v2144_v63  ;;  %v3521_v59 = vld [vmem:[%s4446_s3 + $0x30] sm:$0xff]  }
 0xd39   : > { %3340 = vmatprep.subr.bf16.mxu1 %v3665_v30 }
 0xd3b   : > { %3325 = vmatmul.mubr.msk.bf16.vlgmr.msra.gmra.mxu0 %vm1168_vm3, %v4020_v56 }
 0xd42   : > { %v2072_v7 = vpop.f32.mrf.mxu1 }
 0xd43   : > { %v2079_v8 = vpack.c.bf16 %v2072_v7, %v2072_v7 }
 0xd44   : > { %v3320_v9 = vpop.f32.mrf.mxu1 }
 0xd45   : > { %v2236_v11 = vand.u32 %v2079_v8, %v4012_v49 }
 0xd46   : > { %v2075_v16 = vpop.f32.mrf.mxu1 }
 0xd47   : > { %3334 = vmatprep.subr.bf16.mxu0 %v2236_v11 }
 0xd48   : > { %v3321_v17 = vpop.f32.mrf.mxu1  ;;  %3335 = vmatpush3.bf16.msra.mxu0 %v2236_v11 }
 0xd49   : > { %3348 = vmatprep.subr.bf16.mxu0 %v3665_v30 }
 0xdfb   : > { %v3326_v19 = vpop.f32.mrf.mxu0 }
 0xdfc   : > { %v2134_v22 = vmul.f32 %v3326_v19, %v4029_v2 }
 0xdfd   : > { %v2118_v20 = vpop.f32.mrf.mxu0 }
 0xdfe   : > { %v2132_v23 = vmul.f32 %v2118_v20, %v4034_v3  ;;  %v2136_v10 = vpack.c.bf16 %v2134_v22, %v2134_v22 }
 0xdff   : > { %v3327_v21 = vpop.f32.mrf.mxu0 }
 0xe01   : > { %v2121_v12 = vpop.f32.mrf.mxu0 }
 0xe02   : > { %v2133_v56 = vmul.f32 %v2121_v12, %v4039_v5 }
 0xe04   : > { %v2135_v18 = vpack.c.bf16 %v2133_v56, %v2132_v23 }
 0xe06   : > { %3330 = vmatprep.mubr.msk.bf16.mxu1 %vm1069_vm1, %v2135_v18 }
 0xe07   : > { %3331 = vmatmul.mubr.msk.bf16.vlgmr.msra.gmra.mxu1 %vm1069_vm1, %v2136_v10 }
 0xe08   : > { %3344 = vmatprep.mubr.msk.bf16.mxu1 %vm3666_vm2, %v3665_v30 }
 0xec7   : > { %v3332_v49 = vpop.f32.mrf.mxu1 }
 0xec8   : > { %v2200_v27 = vsel %vm1301_vm6, %v3332_v49, -inf }
 0xec9   : > { %v2180_v14 = vpop.f32.mrf.mxu1 }
 0xeca   : > { %v2194_v13 = vsel %vm1168_vm3, %v2180_v14, -inf }
 0xecb   : > { %2195 = vmax.xlane.f32.xlu0 %v2194_v13  ;;  %v3333_v25 = vpop.f32.mrf.mxu1 }
 0xecd   : > { %v2183_v26 = vpop.f32.mrf.mxu1 }
 0xece   : > { %v2197_v45 = vsel %vm1168_vm3, %v2183_v26, -inf }
 0xecf   : > { %2201 = vmax.xlane.f32.xlu0 %v2200_v27  ;;  %2198 = vmax.xlane.f32.xlu1 %v2197_v45  ;;  %v3524_v27 = vld [vmem:[%s4447_s4 + $0x70] ss:$8 sps:$4 sm:$0xff]   ;;  %v3529_v45 = vld [vmem:[%s4447_s4 + $0x64] ss:$8 sps:$4 sm:$0xff]  }
 0xf54   : > { %v2196_v28 = vpop.xlane.xlu0 %2195 }
 0xf55   : > { %v2203_v31 = vsub.f32 %v2180_v14, %v2196_v28  ;;  %v3527_v28 = vld [vmem:[%s4447_s4 + $0x60] ss:$8 sps:$4 sm:$0xff]  }
 0xf57   : > { %v2206_v32 = vmul.f32 1.442695, %v2203_v31  ;;  %v3532_v31 = vld [vmem:[%s4447_s4 + $0x54] ss:$8 sps:$4 sm:$0xff]  }
 0xf58   : > { %v2202_v15 = vpop.xlane.xlu0 %2201  ;;  %v2199_v33 = vpop.xlane.xlu1 %2198 }
 0xf59   : > { %3578 = vpow2.f32 %v2206_v32  ;;  %v2205_v34 = vsub.f32 %v3332_v49, %v2202_v15  ;;  %v2204_v35 = vsub.f32 %v2183_v26, %v2199_v33  ;;  %v3530_v32 = vld [vmem:[%s4447_s4 + $0x50] ss:$8 sps:$4 sm:$0xff]   ;;  %v3535_v15 = vld [vmem:[%s4447_s4 + $0x44] ss:$8 sps:$4 sm:$0xff]   ;;  %v3533_v33 = vld [vmem:[%s4447_s4 + $0x40] ss:$8 sps:$4 sm:$0xff]  }
 0xf5b   : > { %v2210_v36 = vmul.f32 1.442695, %v2205_v34  ;;  %v2208_v37 = vmul.f32 1.442695, %v2204_v35 }
 0xf5d   : > { %3580 = vpow2.f32 %v2210_v36 }
 0xf5e   : > { %3582 = vpow2.f32 %v2208_v37 }
 0xf66   : > { %v3579_v38 = vpop.eup %3578 }
 0xf67   : > { %v2212_v39 = vsel %vm1168_vm3, %v3579_v38, 0.0 }
 0xf68   : > { %2213 = vadd.xlane.f32.xlu1 %v2212_v39 }
 0xf6a   : > { %v3581_v40 = vpop.eup %3580 }
 0xf6b   : > { %v3583_v41 = vpop.eup %3582  ;;  %v2218_v42 = vsel %vm1301_vm6, %v3581_v40, 0.0 }
 0xf6c   : > { %2219 = vadd.xlane.f32.xlu1 %v2218_v42  ;;  %v2215_v43 = vsel %vm1168_vm3, %v3583_v41, 0.0 }
 0xf6d   : > { %2216 = vadd.xlane.f32.xlu0 %v2215_v43 }
 0xff1   : > { %v2214_v44 = vpop.xlane.xlu1 %2213 }
 0xff2   : > { %3584 = vrcp.f32 %v2214_v44  ;;  %v3536_v44 = vld [vmem:[%s4448_s5 + $0xf8] sm:$0xff]  }
 0xff5   : > { %v2220_v46 = vpop.xlane.xlu1 %2219 }
 0xff6   : > { %v2217_v47 = vpop.xlane.xlu0 %2216  ;;  %3586 = vrcp.f32 %v2220_v46  ;;  %v3537_v46 = vld [vmem:[%s4448_s5 + $0xb8] sm:$0xff]  }
 0xff7   : > { %3588 = vrcp.f32 %v2217_v47  ;;  %v3538_v47 = vld [vmem:[%s4448_s5 + $0xf0] sm:$0xff]  }
 0xfff   : > { %v3585_v48 = vpop.eup %3584 }
0x1000   : > { %v2224_v53 = vmul.f32 %v3585_v48, %v3579_v38  ;;  %v3035_v38 = vld [vmem:[%s4449_s6 + $0xb] ss:$0 sm:$0xff]  ;;  %v3539_v48 = vld [vmem:[%s4448_s5 + $0xb0] sm:$0xff]  }
0x1003   : > { %v3587_v50 = vpop.eup %3586 }
0x1004   : > { %v3589_v51 = vpop.eup %3588  ;;  %v2226_v52 = vmul.f32 %v3587_v50, %v3581_v40  ;;  %v3036_v40 = vld [vmem:[%s4449_s6 + $0xc] ss:$0 sm:$0xff] }
0x1005   : > { %v2225_v54 = vmul.f32 %v3589_v51, %v3583_v41  ;;  %v3540_v50 = vld [vmem:[%s4448_s5 + $0xe8] sm:$0xff]  }
0x1006   : > { %v2228_v55 = vpack.c.bf16 %v2226_v52, %v2226_v52  ;;  %v3541_v51 = vld [vmem:[%s4448_s5 + $0xa8] sm:$0xff]   ;;  %v3542_v52 = vld [vmem:[%s4448_s5 + $0xe0] sm:$0xff]  }
0x1007   : > { %v2227_v57 = vpack.c.bf16 %v2225_v54, %v2224_v53  ;;  %v3543_v53 = vld [vmem:[%s4448_s5 + $0xa0] sm:$0xff]   ;;  %v3544_v54 = vld [vmem:[%s4448_s5 + $0xd8] sm:$0xff]  }
0x1009   : > { %3336 = vmatprep.mubr.msk.bf16.mxu0 %vm1168_vm3, %v2227_v57  ;;  %v3546_v57 = vld [vmem:[%s4448_s5 + $0xd0] sm:$0xff]  }
0x100a   : > { %3337 = vmatmul.mubr.msk.bf16.vlgmr.msra.gmra.mxu0 %vm1168_vm3, %v2228_v55  ;;  %v3545_v55 = vld [vmem:[%s4448_s5 + $0x98] sm:$0xff]  }
0x100b   : > { %3356 = vmatprep.mubr.msk.bf16.mxu0 %vm3666_vm2, %v3665_v30  ;;  %3349 = vmatpush3.bf16.msra.mxu0 %v3520_v58  ;;  %v3547_v58 = vld [vmem:[%s4448_s5 + $0x90] sm:$0xff]  }
0x100c   : > { %3350 = vmatprep.subr.bf16.mxu0 %v3665_v30 }
0x100f   : > { %3351 = vmatpush3.bf16.msra.mxu0 %v3521_v59  ;;  %v3548_v59 = vld [vmem:[%s4448_s5 + $0xc8] sm:$0xff]  }
0x1010   : > { %3352 = vmatprep.subr.bf16.mxu0 %v3665_v30 }
0x1013   : > { %3353 = vmatpush3.bf16.msra.mxu0 %v3522_v60  ;;  %v3549_v60 = vld [vmem:[%s4448_s5 + $0x88] sm:$0xff]  }
0x1014   : > { %3354 = vmatprep.subr.bf16.mxu0 %v3665_v30 }
0x10ca   : > { %v3338_v62 = vpop.f32.mrf.mxu0 }
0x10cb   : > { %v2288_v63 = vmul.f32 %v3338_v62, %v4029_v2  ;;  %v3523_v2 = vld [vmem:[%s4446_s3 + $0x20] sm:$0xff]  }
0x10cc   : > { %v2272_v4 = vpop.f32.mrf.mxu0  ;;  %3355 = vmatpush3.bf16.msra.mxu0 %v3523_v2  ;;  %v3550_v62 = vld [vmem:[%s4448_s5 + $0xc0] sm:$0xff]  }
0x10cd   : > { %v2290_v7 = vpack.c.bf16 %v2288_v63, %v2288_v63  ;;  %v2286_v16 = vmul.f32 %v2272_v4, %v4034_v3  ;;  %3238 = vmatprep.subr.bf16.mxu0 %v3536_v44  ;;  %v3551_v63 = vld [vmem:[%s4448_s5 + $0x80] sm:$0xff]  }
0x10ce   : > { %v3339_v8 = vpop.f32.mrf.mxu0  ;;  %v2981_v4 = vld [vmem:[%s4450_s7 + $0x2] sm:$0x3] }
0x10cf   : > { %v2292_v9 = vsel %vm1175_vm4, %v2290_v7, 0  ;;  %v2454_v7 = vrot.slane %v2981_v4, %v1558_v1  ;;  %v2458_v8 = vrot.slane %v2981_v4, %v1562_v6 }
0x10d0   : > { %v2275_v11 = vpop.f32.mrf.mxu0  ;;  %3341 = vmatpush3.bf16.msra.mxu1 %v2292_v9 }
0x10d1   : > { %v2287_v17 = vmul.f32 %v2275_v11, %v4039_v5  ;;  %3342 = vmatprep.subr.bf16.mxu1 %v3665_v30  ;;  %v3034_v30 = vld [vmem:[%s4449_s6 + $0xa] ss:$0 sm:$0xff] }
0x10d3   : > { %v2289_v19 = vpack.c.bf16 %v2287_v17, %v2286_v16 }
0x10d5   : > { %3343 = vmatpush3.bf16.msra.mxu1 %v2289_v19 }
0x10d8   : > { %3345 = vmatmul.mubr.msk.bf16.vlgmr.msra.gmra.mxu1 %vm1394_vm7, %v4064_v61 }
0x10d9   : > { %2536 = vmatprep.mubr.bf16.mxu1 %v3664_v29 }
0x1198   : > { %v2328_v20 = vpop.f32.mrf.mxu1 }
0x1199   : > { %v2334_v21 = vpack.c.bf16 %v2328_v20, %v2328_v20 }
0x119a   : > { %v3346_v22 = vpop.f32.mrf.mxu1 }
0x119b   : > { %3357 = vmatmul.mubr.msk.bf16.vlgmr.msra.gmra.mxu0 %vm1069_vm1, %v2334_v21 }
0x119c   : > { %v2331_v3 = vpop.f32.mrf.mxu1  ;;  %3239 = vmatpush3.bf16.msra.mxu0 %v3537_v46 }
0x119d   : > { %3240 = vmatprep.subr.bf16.mxu0 %v3538_v47 }
0x119e   : > { %v3347_v5 = vpop.f32.mrf.mxu1 }
0x11a0   : > { %3241 = vmatpush3.bf16.msra.mxu0 %v3539_v48 }
0x11a1   : > { %3242 = vmatprep.subr.bf16.mxu0 %v3540_v50 }
0x11a4   : > { %3243 = vmatpush3.bf16.msra.mxu0 %v3541_v51 }
0x11a5   : > { %3244 = vmatprep.subr.bf16.mxu0 %v3542_v52 }
0x11a8   : > { %3245 = vmatpush3.bf16.msra.mxu0 %v3543_v53 }
0x11a9   : > { %3246 = vmatprep.subr.bf16.mxu0 %v3544_v54 }
0x11ac   : > { %3247 = vmatpush3.bf16.msra.mxu0 %v3545_v55 }
0x11ad   : > { %3248 = vmatprep.subr.bf16.mxu0 %v3546_v57 }
0x11b0   : > { %3249 = vmatpush3.bf16.msra.mxu0 %v3547_v58 }
0x11b1   : > { %3250 = vmatprep.subr.bf16.mxu0 %v3548_v59 }
0x11b4   : > { %3251 = vmatpush3.bf16.msra.mxu0 %v3549_v60 }
0x11b5   : > { %3252 = vmatprep.subr.bf16.mxu0 %v3550_v62 }
0x11b8   : > { %3253 = vmatpush3.bf16.msra.mxu0 %v3551_v63 }
0x125b   : > { %v2405_v12 = vpop.f32.mrf.mxu0 }
0x125c   : > { %v2411_v61 = vadd.f32 %v2405_v12, %v4195_v24  ;;  %v3526_v24 = vld [vmem:[%s4447_s4 + $0x74] ss:$8 sps:$4 sm:$0xff]  }
0x125d   : > { %v3358_v29 = vpop.f32.mrf.mxu0  ;;  %2512 = vmatprep.subr.bf16.mxu1 %v3526_v24 }
0x125e   : > { %v4304_v23 = vadd.f32 %v3034_v30, %v2411_v61  ;;  %2513 = vmatpush1.bf16.msra.mxu1 %v3524_v27 }
0x125f   : > { %v2408_v56 = vpop.f32.mrf.mxu0  ;;  %2514 = vmatprep.subr.bf16.mxu1 %v3529_v45 }
0x1260   : > { %v2417_v18 = vsel %vm963_vm0, %v4304_v23, 0.0 }
0x1261   : > { %2418 = vadd.xlane.f32.xlu0 %v2417_v18  ;;  %v3359_v10 = vpop.f32.mrf.mxu0 }
0x1262   : > { %2515 = vmatpush1.bf16.msra.mxu1 %v3527_v28 }
0x1263   : > { %2516 = vmatprep.subr.bf16.mxu1 %v3532_v31 }
0x1266   : > { %2517 = vmatpush1.bf16.msra.mxu1 %v3530_v32 }
0x1267   : > { %2518 = vmatprep.subr.bf16.mxu1 %v3535_v15 }
0x126a   : > { %2519 = vmatpush1.bf16.msra.mxu1 %v3533_v33 }
0x12ea   : > { %v2419_v49 = vpop.xlane.xlu0 %2418 }
0x12eb   : > { %v2420_v14 = vmul.f32 0.015625, %v2419_v49 }
0x12ed   : > { %v2421_v13 = vsub.f32 %v4304_v23, %v2420_v14 }
0x12ef   : > { %v2422_v25 = vmul.f32 %v2421_v13, %v2421_v13 }
0x12f1   : > { %v2423_v26 = vsel %vm963_vm0, %v2422_v25, 0.0 }
0x12f2   : > { %2424 = vadd.xlane.f32.xlu1 %v2423_v26 }
0x137b   : > { %v2425_v34 = vpop.xlane.xlu1 %2424 }
0x137c   : > { %v2426_v35 = vmul.f32 0.015625, %v2425_v34 }
0x137e   : > { %v2427_v36 = vadd.f32 1e-05, %v2426_v35 }
0x1380   : > { %3590 = vrsqrt.f32 %v2427_v36 }
0x138d   : > { %v3591_v37 = vpop.eup %3590 }
0x138e   : > { %v2429_v39 = vmul.f32 %v3591_v37, %v2421_v13 }
0x1390   : > { %v2434_v41 = vmul.f32 %v3035_v38, %v2429_v39 }
0x1392   : > { %v2439_v42 = vadd.f32 %v3036_v40, %v2434_v41 }
0x1394   : > { %v2440_v43 = vpack.c.bf16 %v2439_v42, %v2439_v42 }
0x1396   : > { %3053 = vmatmul.mubr.msk.bf16.vlgmr.msra.gmra.mxu1 %vm1069_vm1, %v2440_v43 }
0x1456   : > { %v2538_v9 = vpop.f32.mrf.mxu1 }
0x1457   : > { %v2539_v11 = vadd.f32 %v2538_v9, %v2454_v7 }
0x1458   : > { %v2540_v16 = vpop.f32.mrf.mxu1 }
0x1459   : > { %v2547_v17 = vmul.f32 0.70710677, %v2539_v11  ;;  %v2541_v19 = vadd.f32 %v2540_v16, %v2458_v8  ;;  %v2545_v52 = vmul.f32 0.5, %v2539_v11  ;;  %v3102_v8 = vld [vmem:[%s4449_s6 + $0xd] ss:$0 sm:$0xff] }
0x145a   : > { %v2542_v2 = vpop.f32.mrf.mxu1 }
0x145b   : > { %v2549_v20 = vand.u32 2147483647, %v2547_v17  ;;  %v2548_v21 = vmul.f32 0.70710677, %v2541_v19  ;;  %vm2589_vm10 = vcmp.ge.f32.partialorder %v2547_v17, 0.0  ;;  %v2546_v54 = vmul.f32 0.5, %v2541_v19 }
0x145c   : > { %v2543_v22 = vpop.f32.mrf.mxu1 }
0x145d   : > { %v2551_v3 = vmul.f32 0.3275911, %v2549_v20  ;;  %v2550_v5 = vand.u32 2147483647, %v2548_v21  ;;  %v2577_v1 = vsub.f32 0.0, %v2549_v20  ;;  %vm2590_vm11 = vcmp.ge.f32.partialorder %v2548_v21, 0.0 }
0x145f   : > { %v2553_v30 = vadd.f32 1.0, %v2551_v3  ;;  %v2552_v12 = vmul.f32 0.3275911, %v2550_v5  ;;  %v2578_v29 = vsub.f32 0.0, %v2550_v5  ;;  %v2579_v0 = vmul.f32 %v2577_v1, %v2549_v20  ;;  %v2777_v1 = vld [vmem:[%s4455_s12 + $0x1] sm:$0x1] }
0x1461   : > { %3592 = vrcp.f32 %v2553_v30  ;;  %v2554_v61 = vadd.f32 1.0, %v2552_v12  ;;  %v2580_v56 = vmul.f32 %v2578_v29, %v2550_v5  ;;  %v2581_v10 = vmul.f32 1.442695, %v2579_v0  ;;  %v2776_v12 = vld [vmem:[%s4455_s12] sm:$0x1] }
0x1463   : > { %3594 = vrcp.f32 %v2554_v61  ;;  %v2583_v13 = vmul.f32 1.442695, %v2580_v56 }
0x1464   : > { %3596 = vpow2.f32 %v2581_v10 }
0x1465   : > { %3598 = vpow2.f32 %v2583_v13 }
0x146e   : > { %v3593_v6 = vpop.eup %3592 }
0x146f   : > { %v2559_v18 = vmul.f32 1.0614054, %v3593_v6 }
0x1470   : > { %v3595_v49 = vpop.eup %3594 }
0x1471   : > { %v2561_v14 = vadd.f32 -1.4531521, %v2559_v18  ;;  %v2560_v25 = vmul.f32 1.0614054, %v3595_v49  ;;  %v3597_v38 = vpop.eup %3596 }
0x1472   : > { %v3599_v42 = vpop.eup %3598 }
0x1473   : > { %v2563_v26 = vmul.f32 %v3593_v6, %v2561_v14  ;;  %v2562_v24 = vadd.f32 -1.4531521, %v2560_v25 }
0x1475   : > { %v2565_v27 = vadd.f32 1.4214138, %v2563_v26  ;;  %v2564_v45 = vmul.f32 %v3595_v49, %v2562_v24 }
0x1477   : > { %v2567_v28 = vmul.f32 %v3593_v6, %v2565_v27  ;;  %v2566_v31 = vadd.f32 1.4214138, %v2564_v45 }
0x1479   : > { %v2569_v32 = vadd.f32 -0.28449672, %v2567_v28  ;;  %v2568_v15 = vmul.f32 %v3595_v49, %v2566_v31 }
0x147b   : > { %v2571_v33 = vmul.f32 %v3593_v6, %v2569_v32  ;;  %v2570_v34 = vadd.f32 -0.28449672, %v2568_v15 }
0x147d   : > { %v2573_v35 = vadd.f32 0.2548296, %v2571_v33  ;;  %v2572_v36 = vmul.f32 %v3595_v49, %v2570_v34 }
0x147f   : > { %v2575_v37 = vmul.f32 %v3593_v6, %v2573_v35  ;;  %v2574_v39 = vadd.f32 0.2548296, %v2572_v36 }
0x1481   : > { %v2585_v40 = vmul.f32 %v3597_v38, %v2575_v37  ;;  %v2576_v41 = vmul.f32 %v3595_v49, %v2574_v39 }
0x1483   : > { %v2587_v43 = vsub.f32 1.0, %v2585_v40  ;;  %v2586_v44 = vmul.f32 %v3599_v42, %v2576_v41 }
0x1485   : > { %v2591_v46 = vsub.f32 0.0, %v2587_v43  ;;  %v2588_v47 = vsub.f32 1.0, %v2586_v44 }
0x1487   : > { %v2593_v48 = vsel %vm2589_vm10, %v2587_v43, %v2591_v46  ;;  %v2592_v51 = vsub.f32 0.0, %v2588_v47 }
0x1488   : > { %v2595_v50 = vadd.f32 1.0, %v2593_v48 }
0x1489   : > { %v2594_v53 = vsel %vm2590_vm11, %v2588_v47, %v2592_v51 }
0x148a   : > { %v2596_v55 = vadd.f32 1.0, %v2594_v53  ;;  %v2597_v57 = vmul.f32 %v2595_v50, %v2545_v52 }
0x148c   : > { %v2598_v58 = vmul.f32 %v2596_v55, %v2546_v54  ;;  %v2599_v60 = vpack.c.bf16 %v2597_v57, %v2597_v57 }
0x148e   : > { %v2600_v59 = vpack.c.bf16 %v2598_v58, %v2598_v58 }
0x1490   : > { %2762 = vmatprep.mubr.bf16.mxu0 %v2600_v59 }
0x1491   : > { %2763 = vmatmul.mubr.bf16.vlgmr.msra.gmra.mxu0 %v2599_v60 }
0x1551   : > { %v3254_v62 = vpop.f32.mrf.mxu0 }
0x1553   : > { %v3255_v63 = vpop.f32.mrf.mxu0 }
0x1554   : > { %v3256_v4 = vadd.f32 %v3255_v63, %v3254_v62 }
0x1555   : > { %v3257_v7 = vpop.f32.mrf.mxu0 }
0x1556   : > { %v2770_v9 = vadd.f32 %v3256_v4, %v4304_v23 }
0x1557   : > { %v3258_v11 = vpop.f32.mrf.mxu0 }
0x1558   : > { %v2775_v16 = vadd.f32 %v3102_v8, %v2770_v9 }
0x155a   : > { %v2779_v17 = vsel %vm2778_vm12, %v2775_v16, 0.0 }
0x155b   : > { %2780 = vadd.xlane.f32.xlu0 %v2779_v17 }
0x15e4   : > { %v2781_v19 = vpop.xlane.xlu0 %2780 }
0x15e5   : > { %v2782_v2 = vmul.f32 0.015625, %v2781_v19 }
0x15e7   : > { %v2783_v20 = vsub.f32 %v2775_v16, %v2782_v2 }
0x15e9   : > { %v2784_v21 = vmul.f32 %v2783_v20, %v2783_v20 }
0x15eb   : > { %v2785_v22 = vsel %vm2778_vm12, %v2784_v21, 0.0 }
0x15ec   : > { %2786 = vadd.xlane.f32.xlu1 %v2785_v22 }
0x1675   : > { %v2787_v3 = vpop.xlane.xlu1 %2786 }
0x1676   : > { %v2788_v5 = vmul.f32 0.015625, %v2787_v3 }
0x1678   : > { %v2789_v30 = vadd.f32 1e-05, %v2788_v5 }
0x167a   : > { %3600 = vrsqrt.f32 %v2789_v30 }
0x1687   : > { %v3601_v23 = vpop.eup %3600 }
0x1688   : > { %v2791_v61 = vmul.f32 %v3601_v23, %v2783_v20 }
0x168a   : > { %v2792_v29 = vmul.f32 %v2791_v61, %v2776_v12 }
0x168c   : > { %v2793_v0 = vadd.f32 %v2792_v29, %v2777_v1 }
0x168e   : > { %2794 = vst.msk [vmem:[%s432_s17] sm:$0x1] %vm2778_vm12, %v2793_v0 }
0x168f   : > { %3615 = shalt.err (!%p3612_p3)
}
0x1690   : > { %s3616_s16 = scalar_lea.hbm %s2806_s23, 16  ;;  %s3620_s17 = scalar_lea.hbm %s4456_s13, 32 }
0x1691   : > { %p3617_p4 = scmp.ne.s32.totalorder %s2806_s23, %s3616_s16  ;;  %p3621_p9 = scmp.lt.s32.totalorder %s2806_s23, %s4456_s13 }
0x1692   : > { %p3622_p10 = scmp.lt.s32.totalorder %s3620_s17, %s3616_s16 }
0x1693   : > { %p3618_p7 = pnand %p3617_p4, %p3777_p5 }
0x1694   : > { %p3623_p11 = por %p3622_p10, %p3621_p9 }
0x1695   : > { %p3619_p8 = pneg %p3618_p7 }
0x1697   : > { %p3624_p12 = pnand %p3623_p11, %p3619_p8 }
0x1699   : > { %3627 = shalt.err (!%p3624_p12)
}
0x169a   : > { %3363 = dma.vmem_to_hbm [thread:$0]  (%p3777_p5), %s2809_s22, 16, %s2806_s23, %s2796_s0  }
0x169b PF: > { %p3369_p13 = scmp.ge.s32.totalorder %s3662_s28, 2  ;;  %s2820_s30 = sand.u32 1, %s3650_s25  }
0x169c   : > { %s2821_s15 = scalar_lea.sflag [#allocation3], %s2820_s30 }
0x169d   : > { %p3366_p0 = pnand %p3369_p13, %p3781_p6 }
0x169f   : > { %p3367_p1 = pneg %p3366_p0 }
0x16a1   : > { %3645 = dma.done.wait (%p3367_p1), %s2821_s15, 16  }
0x16a2   : > { %3647 = vsyncadd (%p3367_p1), %s2821_s15, 4294967280  ;;  %s4467_s28 = sld [smem:[#allocation6_spill]]  ;;  %s4470_s25 = smov %s3654_s26 }
0x16a3   : > { %s4468_s21 = sld [smem:[#allocation5_spill]] }
0x16a4   : > { %s4469_s27 = sld [smem:[#allocation7_spill]] }
0x16a8   : > { %p23_p2 = scmp.ge.s32.totalorder %s4467_s28, 4  }
0x16a9   : > { %s4471_s26 = smov %s4468_s21 }
0x16aa   :  { %25 = sbr.rel (!%p23_p2) target bundleno = 5 (0x5), region = 113 }
0x16af   :  { %2825 = vsyncpa [#allocation3], 1 }
0x16b0   :  { %2827 = vsyncpa [#allocation3 + $0x1], 1 }

</bundles_post_ra>
